<compile_context>
chip_gen: v7x
topology: tpu7x:2x2x1
jax: 0.10.0
libtpu: 0.0.40
codegen_flags: <defaults>
</compile_context>

<pallas_src>
import jax
import jax.numpy as jnp
from jax import lax
from jax.experimental import pallas as pl
from jax.experimental.pallas import tpu as pltpu


_ROW0 = 8     # aligned sublane offset of the activation rows inside the scratch
_LANE0 = 128  # aligned lane offset of the activation lanes inside the scratch


# ---------------------------------------------------------------------------
# Fused Block kernel (all units + skip path, one image per grid step)
# ---------------------------------------------------------------------------
def _make_block_kernel(n_units, H, W):
    def kernel(*refs):
        x_ref = refs[0]
        unit_refs = refs[1:1 + 6 * n_units]
        skip_w_ref, skip_s_ref, skip_b_ref = refs[1 + 6 * n_units:4 + 6 * n_units]
        out_ref = refs[4 + 6 * n_units]
        pad_ref = refs[5 + 6 * n_units]

        # Zero the padded scratch once per image: the never-written border
        # rows/lanes around the data region are the fixed_padding zeros.
        pad_ref[...] = jnp.zeros_like(pad_ref)

        x2d = x_ref[...]                       # (H, W*Cin) lane-packed
        act = x2d

        for u in range(n_units):
            dw_ref, s1_ref, b1_ref, pw_ref, s2_ref, b2_ref = \
                unit_refs[6 * u:6 * u + 6]
            lc_in = pw_ref.shape[0]            # W * Ci
            lc_out = pw_ref.shape[1]           # W * Co
            ci = lc_in // W

            # ReLU hoisted: applied exactly once per unit.
            r = jnp.maximum(act, 0.0)

            # Aligned store into the zero-padded scratch, then ONE load; the
            # 9 depthwise windows are static slices of that value.
            pad_ref[_ROW0:_ROW0 + H, _LANE0:_LANE0 + lc_in] = r
            xv = pad_ref[...]
            dwv = dw_ref[...]                  # (9, 1, W*Ci)

            acc = jnp.zeros((H, lc_in), jnp.float32)
            for i in range(3):
                for j in range(3):
                    r0 = _ROW0 - 1 + i
                    l0 = _LANE0 - ci + j * ci
                    win = xv[r0:r0 + H, l0:l0 + lc_in]
                    acc = acc + win * dwv[3 * i + j]   # depthwise tap (i, j)

            # Folded BN(inplanes) of the SeparableConv2d.
            y = acc * s1_ref[...] + b1_ref[...]

            # Pointwise 1x1 conv as a block-diagonal matmul on the MXU.
            z = jnp.dot(y, pw_ref[...], preferred_element_type=jnp.float32)

            # Folded BN(planes) that follows the SeparableConv2d in `rep`.
            act = z * s2_ref[...] + b2_ref[...]

        # Skip path: BN(1x1 conv(x)); x tile is already resident in VMEM.
        sk = jnp.dot(x2d, skip_w_ref[...], preferred_element_type=jnp.float32)
        sk = sk * skip_s_ref[...] + skip_b_ref[...]

        out_ref[...] = act + sk                # (H, W*Cout): lane-dense store

    return kernel


# ---------------------------------------------------------------------------
# Wrapper: layout packing + pallas_call
# ---------------------------------------------------------------------------
def _pack_row(v, W):
    # per-channel vector (C,) -> packed lane row (1, W*C), index w*C + c
    return jnp.tile(v, (W,)).reshape(1, -1)


def block_forward(x_nchw, params):
    """x: (N, Cin, H, W) NCHW float32 -> (N, Cout, H, W)."""
    N, Cin, H, W = x_nchw.shape
    units = params['units']
    n_units = len(units)
    Cout = params['skip_w'].shape[1]
    Cmax = max([Cin, Cout] + [u['pw'].shape[1] for u in units])

    # NCHW -> NHWC -> lane-packed (N, H, W*Cin)  (wrapper-side layout plumbing)
    xp = jnp.transpose(x_nchw, (0, 2, 3, 1)).astype(jnp.float32)
    xp = xp.reshape(N, H, W * Cin)

    eye_w = jnp.eye(W, dtype=jnp.float32)

    inputs = [xp]
    in_specs = [pl.BlockSpec((None, H, W * Cin), lambda n: (n, 0, 0))]

    def add_const(a):
        inputs.append(a)
        in_specs.append(pl.BlockSpec(a.shape, lambda n, nd=a.ndim: (0,) * nd))

    for u in units:
        ci = u['dw'].shape[-1]
        co = u['pw'].shape[1]
        # depthwise taps packed per-lane: (9, 1, W*ci), [t, 0, w*ci+c] = dw[t, c]
        add_const(jnp.tile(u['dw'].reshape(9, ci), (1, W)).reshape(9, 1, W * ci))
        add_const(_pack_row(u['s1'], W))
        add_const(_pack_row(u['b1'], W))
        # pointwise 1x1 conv as block-diagonal (W*ci, W*co) matrix
        add_const(jnp.kron(eye_w, u['pw']))
        add_const(_pack_row(u['s2'], W))
        add_const(_pack_row(u['b2'], W))

    add_const(jnp.kron(eye_w, params['skip_w']))      # (W*Cin, W*Cout)
    add_const(_pack_row(params['skip_s'], W))
    add_const(_pack_row(params['skip_b'], W))

    rows = _ROW0 + H + 2
    lanes = _LANE0 + (W + 2) * Cmax

    out_packed = pl.pallas_call(
        _make_block_kernel(n_units, H, W),
        out_shape=jax.ShapeDtypeStruct((N, H, W * Cout), jnp.float32),
        grid_spec=pltpu.PrefetchScalarGridSpec(
            num_scalar_prefetch=0,
            grid=(N,),
            in_specs=in_specs,
            out_specs=pl.BlockSpec((None, H, W * Cout), lambda n: (n, 0, 0)),
            scratch_shapes=[pltpu.VMEM((rows, lanes), jnp.float32)],
        ),
        compiler_params=pltpu.CompilerParams(
            dimension_semantics=("parallel",)),
    )(*inputs)

    return jnp.transpose(out_packed.reshape(N, H, W, Cout), (0, 3, 1, 2))


# ---------------------------------------------------------------------------
# Parameters (deterministic, synthetic) -- BN folded to (scale, shift)
# ---------------------------------------------------------------------------
def _fold_bn(gamma, beta, mean, var, eps=1e-5):
    scale = gamma / jnp.sqrt(var + eps)
    shift = beta - mean * scale
    return scale, shift


def _make_bn(c, salt):
    idx = jnp.arange(c, dtype=jnp.float32)
    gamma = 1.0 + 0.05 * jnp.cos(idx + salt)
    beta = 0.02 * jnp.sin(idx + 0.5 * salt)
    mean = 0.01 * jnp.sin(idx - salt)
    var = 1.0 + 0.1 * jnp.cos(0.3 * idx + salt) ** 2
    return _fold_bn(gamma, beta, mean, var)


def make_block_params(key, inplanes, planes, reps):
    # rep = [ReLU, SepConv(in->planes), BN(planes)]
    #       + (reps-1) * [ReLU, SepConv(planes->planes), BN(planes)]
    #       + [ReLU, SepConv(planes->planes), BN(planes)]   (stride==1, is_last)
    unit_io = ([(inplanes, planes)]
               + [(planes, planes)] * (reps - 1)
               + [(planes, planes)])
    units = []
    for u, (ci, co) in enumerate(unit_io):
        key, k1, k2 = jax.random.split(key, 3)
        dw = 0.2 * jax.random.normal(k1, (3, 3, ci), jnp.float32)   # depthwise 3x3
        pw = 0.2 * jax.random.normal(k2, (ci, co), jnp.float32)     # pointwise 1x1
        s1, b1 = _make_bn(ci, 1.0 + u)   # BN inside SeparableConv2d
        s2, b2 = _make_bn(co, 2.0 + u)   # BN after SeparableConv2d
        units.append(dict(dw=dw, pw=pw, s1=s1, b1=b1, s2=s2, b2=b2))
    key, k3 = jax.random.split(key)
    skip_w = 0.2 * jax.random.normal(k3, (inplanes, planes), jnp.float32)
    skip_s, skip_b = _make_bn(planes, 7.0)
    return dict(units=units, skip_w=skip_w, skip_s=skip_s, skip_b=skip_b)


# ---------------------------------------------------------------------------
# Pure-JAX reference
# ---------------------------------------------------------------------------
def block_reference(x_nchw, params):
    x = jnp.transpose(x_nchw, (0, 2, 3, 1)).astype(jnp.float32)
    out = x
    for u in params['units']:
        ci = u['dw'].shape[-1]
        xr = jnp.maximum(out, 0.0)
        xp = jnp.pad(xr, ((0, 0), (1, 1), (1, 1), (0, 0)))
        y = lax.conv_general_dilated(
            xp, u['dw'].reshape(3, 3, 1, ci), (1, 1), 'VALID',
            dimension_numbers=('NHWC', 'HWIO', 'NHWC'),
            feature_group_count=ci, precision=lax.Precision.HIGHEST)
        y = y * u['s1'].reshape(1, 1, 1, -1) + u['b1'].reshape(1, 1, 1, -1)
        z = jnp.einsum('nhwc,cd->nhwd', y, u['pw'],
                       precision=lax.Precision.HIGHEST)
        out = z * u['s2'].reshape(1, 1, 1, -1) + u['b2'].reshape(1, 1, 1, -1)
    sk = jnp.einsum('nhwc,cd->nhwd', x, params['skip_w'],
                    precision=lax.Precision.HIGHEST)
    sk = sk * params['skip_s'].reshape(1, 1, 1, -1) \
         + params['skip_b'].reshape(1, 1, 1, -1)
    return jnp.transpose(out + sk, (0, 3, 1, 2))


if __name__ == "__main__":
    key = jax.random.PRNGKey(0)
    kx, kp = jax.random.split(key)

    N, Cin, H, W = 2, 4, 16, 16     # input (NCHW), inplanes = 4
    planes, reps = 8, 2             # Block(inplanes=4, planes=8, reps=2)

    x = jax.random.normal(kx, (N, Cin, H, W), jnp.float32)
    params = make_block_params(kp, Cin, planes, reps)

    out = jax.block_until_ready(block_forward(x, params))
    ref = jax.block_until_ready(block_reference(x, params))

    assert out.shape == (N, planes, H, W)
    assert bool(jnp.all(jnp.isfinite(out)))
    assert bool(jnp.allclose(out, ref, atol=1e-3, rtol=1e-3))
    print("KERNEL_OK")
</pallas_src>

<mosaic_0001>
module attributes {stable_mosaic.version = 11 : i64} {
  func.func @kernel(%arg0: i32, %arg1: memref<1x16x64xf32, #tpu.memory_space<vmem>>, %arg2: memref<9x1x64xf32, #tpu.memory_space<vmem>>, %arg3: memref<1x64xf32, #tpu.memory_space<vmem>>, %arg4: memref<1x64xf32, #tpu.memory_space<vmem>>, %arg5: memref<64x128xf32, #tpu.memory_space<vmem>>, %arg6: memref<1x128xf32, #tpu.memory_space<vmem>>, %arg7: memref<1x128xf32, #tpu.memory_space<vmem>>, %arg8: memref<9x1x128xf32, #tpu.memory_space<vmem>>, %arg9: memref<1x128xf32, #tpu.memory_space<vmem>>, %arg10: memref<1x128xf32, #tpu.memory_space<vmem>>, %arg11: memref<128x128xf32, #tpu.memory_space<vmem>>, %arg12: memref<1x128xf32, #tpu.memory_space<vmem>>, %arg13: memref<1x128xf32, #tpu.memory_space<vmem>>, %arg14: memref<9x1x128xf32, #tpu.memory_space<vmem>>, %arg15: memref<1x128xf32, #tpu.memory_space<vmem>>, %arg16: memref<1x128xf32, #tpu.memory_space<vmem>>, %arg17: memref<128x128xf32, #tpu.memory_space<vmem>>, %arg18: memref<1x128xf32, #tpu.memory_space<vmem>>, %arg19: memref<1x128xf32, #tpu.memory_space<vmem>>, %arg20: memref<64x128xf32, #tpu.memory_space<vmem>>, %arg21: memref<1x128xf32, #tpu.memory_space<vmem>>, %arg22: memref<1x128xf32, #tpu.memory_space<vmem>>, %arg23: memref<1x16x128xf32, #tpu.memory_space<vmem>>, %arg24: memref<26x272xf32, #tpu.memory_space<vmem>>) attributes {dimension_semantics = [#tpu.dimension_semantics<parallel>], iteration_bounds = array<i64: 2>, scalar_prefetch = 0 : i64, scratch_operands = 1 : i64, tpu.core_type = #tpu.core_type<tc>, window_params = [{transform_indices = @transform_0, window_bounds = array<i64: 1, 16, 64>}, {pipeline_mode = #tpu.pipeline_mode<synchronous>, transform_indices = @transform_1, window_bounds = array<i64: 9, 1, 64>}, {pipeline_mode = #tpu.pipeline_mode<synchronous>, transform_indices = @transform_2, window_bounds = array<i64: 1, 64>}, {pipeline_mode = #tpu.pipeline_mode<synchronous>, transform_indices = @transform_3, window_bounds = array<i64: 1, 64>}, {pipeline_mode = #tpu.pipeline_mode<synchronous>, transform_indices = @transform_4, window_bounds = array<i64: 64, 128>}, {pipeline_mode = #tpu.pipeline_mode<synchronous>, transform_indices = @transform_5, window_bounds = array<i64: 1, 128>}, {pipeline_mode = #tpu.pipeline_mode<synchronous>, transform_indices = @transform_6, window_bounds = array<i64: 1, 128>}, {pipeline_mode = #tpu.pipeline_mode<synchronous>, transform_indices = @transform_7, window_bounds = array<i64: 9, 1, 128>}, {pipeline_mode = #tpu.pipeline_mode<synchronous>, transform_indices = @transform_8, window_bounds = array<i64: 1, 128>}, {pipeline_mode = #tpu.pipeline_mode<synchronous>, transform_indices = @transform_9, window_bounds = array<i64: 1, 128>}, {pipeline_mode = #tpu.pipeline_mode<synchronous>, transform_indices = @transform_10, window_bounds = array<i64: 128, 128>}, {pipeline_mode = #tpu.pipeline_mode<synchronous>, transform_indices = @transform_11, window_bounds = array<i64: 1, 128>}, {pipeline_mode = #tpu.pipeline_mode<synchronous>, transform_indices = @transform_12, window_bounds = array<i64: 1, 128>}, {pipeline_mode = #tpu.pipeline_mode<synchronous>, transform_indices = @transform_13, window_bounds = array<i64: 9, 1, 128>}, {pipeline_mode = #tpu.pipeline_mode<synchronous>, transform_indices = @transform_14, window_bounds = array<i64: 1, 128>}, {pipeline_mode = #tpu.pipeline_mode<synchronous>, transform_indices = @transform_15, window_bounds = array<i64: 1, 128>}, {pipeline_mode = #tpu.pipeline_mode<synchronous>, transform_indices = @transform_16, window_bounds = array<i64: 128, 128>}, {pipeline_mode = #tpu.pipeline_mode<synchronous>, transform_indices = @transform_17, window_bounds = array<i64: 1, 128>}, {pipeline_mode = #tpu.pipeline_mode<synchronous>, transform_indices = @transform_18, window_bounds = array<i64: 1, 128>}, {pipeline_mode = #tpu.pipeline_mode<synchronous>, transform_indices = @transform_19, window_bounds = array<i64: 64, 128>}, {pipeline_mode = #tpu.pipeline_mode<synchronous>, transform_indices = @transform_20, window_bounds = array<i64: 1, 128>}, {pipeline_mode = #tpu.pipeline_mode<synchronous>, transform_indices = @transform_21, window_bounds = array<i64: 1, 128>}, {transform_indices = @transform_22, window_bounds = array<i64: 1, 16, 128>}]} {
    %cst = arith.constant 0.000000e+00 : f32
    %0 = vector.broadcast %cst : f32 to vector<26x272xf32>
    %c0 = arith.constant 0 : index
    %c0_0 = arith.constant 0 : index
    %1 = vector.load %arg24[%c0, %c0_0] : memref<26x272xf32, #tpu.memory_space<vmem>>, vector<26x272xf32>
    tpu.vector_store %arg24[%c0, %c0_0], %0 {strides = array<i32>} : memref<26x272xf32, #tpu.memory_space<vmem>>, vector<26x272xf32>,
    %c0_1 = arith.constant 0 : index
    %c0_2 = arith.constant 0 : index
    %c0_3 = arith.constant 0 : index
    %2 = vector.load %arg1[%c0_1, %c0_2, %c0_3] : memref<1x16x64xf32, #tpu.memory_space<vmem>>, vector<1x16x64xf32>
    %3 = vector.shape_cast %2 : vector<1x16x64xf32> to vector<16x64xf32>
    %cst_4 = arith.constant 0.000000e+00 : f32
    %4 = vector.broadcast %cst_4 : f32 to vector<16x64xf32>
    %5 = arith.maximumf %3, %4 : vector<16x64xf32>
    %c8 = arith.constant 8 : index
    %c128 = arith.constant 128 : index
    %6 = vector.load %arg24[%c8, %c128] : memref<26x272xf32, #tpu.memory_space<vmem>>, vector<16x64xf32>
    tpu.vector_store %arg24[%c8, %c128], %5 {strides = array<i32>} : memref<26x272xf32, #tpu.memory_space<vmem>>, vector<16x64xf32>,
    %c0_5 = arith.constant 0 : index
    %c0_6 = arith.constant 0 : index
    %7 = vector.load %arg24[%c0_5, %c0_6] : memref<26x272xf32, #tpu.memory_space<vmem>>, vector<26x272xf32>
    %c0_7 = arith.constant 0 : index
    %c0_8 = arith.constant 0 : index
    %c0_9 = arith.constant 0 : index
    %8 = vector.load %arg2[%c0_7, %c0_8, %c0_9] : memref<9x1x64xf32, #tpu.memory_space<vmem>>, vector<9x1x64xf32>
    %cst_10 = arith.constant 0.000000e+00 : f32
    %9 = vector.broadcast %cst_10 : f32 to vector<16x64xf32>
    %10 = vector.extract_strided_slice %7 {offsets = [7, 124], sizes = [16, 64], strides = [1, 1]} : vector<26x272xf32> to vector<16x64xf32>
    %11 = vector.extract_strided_slice %8 {offsets = [0, 0, 0], sizes = [1, 1, 64], strides = [1, 1, 1]} : vector<9x1x64xf32> to vector<1x1x64xf32>
    %12 = vector.shape_cast %11 : vector<1x1x64xf32> to vector<1x64xf32>
    %13 = vector.broadcast %12 : vector<1x64xf32> to vector<16x64xf32>
    %14 = arith.mulf %10, %13 : vector<16x64xf32>
    %15 = arith.addf %9, %14 : vector<16x64xf32>
    %16 = vector.extract_strided_slice %7 {offsets = [7, 128], sizes = [16, 64], strides = [1, 1]} : vector<26x272xf32> to vector<16x64xf32>
    %17 = vector.extract_strided_slice %8 {offsets = [1, 0, 0], sizes = [1, 1, 64], strides = [1, 1, 1]} : vector<9x1x64xf32> to vector<1x1x64xf32>
    %18 = vector.shape_cast %17 : vector<1x1x64xf32> to vector<1x64xf32>
    %19 = vector.broadcast %18 : vector<1x64xf32> to vector<16x64xf32>
    %20 = arith.mulf %16, %19 : vector<16x64xf32>
    %21 = arith.addf %15, %20 : vector<16x64xf32>
    %22 = vector.extract_strided_slice %7 {offsets = [7, 132], sizes = [16, 64], strides = [1, 1]} : vector<26x272xf32> to vector<16x64xf32>
    %23 = vector.extract_strided_slice %8 {offsets = [2, 0, 0], sizes = [1, 1, 64], strides = [1, 1, 1]} : vector<9x1x64xf32> to vector<1x1x64xf32>
    %24 = vector.shape_cast %23 : vector<1x1x64xf32> to vector<1x64xf32>
    %25 = vector.broadcast %24 : vector<1x64xf32> to vector<16x64xf32>
    %26 = arith.mulf %22, %25 : vector<16x64xf32>
    %27 = arith.addf %21, %26 : vector<16x64xf32>
    %28 = vector.extract_strided_slice %7 {offsets = [8, 124], sizes = [16, 64], strides = [1, 1]} : vector<26x272xf32> to vector<16x64xf32>
    %29 = vector.extract_strided_slice %8 {offsets = [3, 0, 0], sizes = [1, 1, 64], strides = [1, 1, 1]} : vector<9x1x64xf32> to vector<1x1x64xf32>
    %30 = vector.shape_cast %29 : vector<1x1x64xf32> to vector<1x64xf32>
    %31 = vector.broadcast %30 : vector<1x64xf32> to vector<16x64xf32>
    %32 = arith.mulf %28, %31 : vector<16x64xf32>
    %33 = arith.addf %27, %32 : vector<16x64xf32>
    %34 = vector.extract_strided_slice %7 {offsets = [8, 128], sizes = [16, 64], strides = [1, 1]} : vector<26x272xf32> to vector<16x64xf32>
    %35 = vector.extract_strided_slice %8 {offsets = [4, 0, 0], sizes = [1, 1, 64], strides = [1, 1, 1]} : vector<9x1x64xf32> to vector<1x1x64xf32>
    %36 = vector.shape_cast %35 : vector<1x1x64xf32> to vector<1x64xf32>
    %37 = vector.broadcast %36 : vector<1x64xf32> to vector<16x64xf32>
    %38 = arith.mulf %34, %37 : vector<16x64xf32>
    %39 = arith.addf %33, %38 : vector<16x64xf32>
    %40 = vector.extract_strided_slice %7 {offsets = [8, 132], sizes = [16, 64], strides = [1, 1]} : vector<26x272xf32> to vector<16x64xf32>
    %41 = vector.extract_strided_slice %8 {offsets = [5, 0, 0], sizes = [1, 1, 64], strides = [1, 1, 1]} : vector<9x1x64xf32> to vector<1x1x64xf32>
    %42 = vector.shape_cast %41 : vector<1x1x64xf32> to vector<1x64xf32>
    %43 = vector.broadcast %42 : vector<1x64xf32> to vector<16x64xf32>
    %44 = arith.mulf %40, %43 : vector<16x64xf32>
    %45 = arith.addf %39, %44 : vector<16x64xf32>
    %46 = vector.extract_strided_slice %7 {offsets = [9, 124], sizes = [16, 64], strides = [1, 1]} : vector<26x272xf32> to vector<16x64xf32>
    %47 = vector.extract_strided_slice %8 {offsets = [6, 0, 0], sizes = [1, 1, 64], strides = [1, 1, 1]} : vector<9x1x64xf32> to vector<1x1x64xf32>
    %48 = vector.shape_cast %47 : vector<1x1x64xf32> to vector<1x64xf32>
    %49 = vector.broadcast %48 : vector<1x64xf32> to vector<16x64xf32>
    %50 = arith.mulf %46, %49 : vector<16x64xf32>
    %51 = arith.addf %45, %50 : vector<16x64xf32>
    %52 = vector.extract_strided_slice %7 {offsets = [9, 128], sizes = [16, 64], strides = [1, 1]} : vector<26x272xf32> to vector<16x64xf32>
    %53 = vector.extract_strided_slice %8 {offsets = [7, 0, 0], sizes = [1, 1, 64], strides = [1, 1, 1]} : vector<9x1x64xf32> to vector<1x1x64xf32>
    %54 = vector.shape_cast %53 : vector<1x1x64xf32> to vector<1x64xf32>
    %55 = vector.broadcast %54 : vector<1x64xf32> to vector<16x64xf32>
    %56 = arith.mulf %52, %55 : vector<16x64xf32>
    %57 = arith.addf %51, %56 : vector<16x64xf32>
    %58 = vector.extract_strided_slice %7 {offsets = [9, 132], sizes = [16, 64], strides = [1, 1]} : vector<26x272xf32> to vector<16x64xf32>
    %59 = vector.extract_strided_slice %8 {offsets = [8, 0, 0], sizes = [1, 1, 64], strides = [1, 1, 1]} : vector<9x1x64xf32> to vector<1x1x64xf32>
    %60 = vector.shape_cast %59 : vector<1x1x64xf32> to vector<1x64xf32>
    %61 = vector.broadcast %60 : vector<1x64xf32> to vector<16x64xf32>
    %62 = arith.mulf %58, %61 : vector<16x64xf32>
    %63 = arith.addf %57, %62 : vector<16x64xf32>
    %c0_11 = arith.constant 0 : index
    %c0_12 = arith.constant 0 : index
    %64 = vector.load %arg3[%c0_11, %c0_12] : memref<1x64xf32, #tpu.memory_space<vmem>>, vector<1x64xf32>
    %65 = vector.broadcast %64 : vector<1x64xf32> to vector<16x64xf32>
    %66 = arith.mulf %63, %65 : vector<16x64xf32>
    %c0_13 = arith.constant 0 : index
    %c0_14 = arith.constant 0 : index
    %67 = vector.load %arg4[%c0_13, %c0_14] : memref<1x64xf32, #tpu.memory_space<vmem>>, vector<1x64xf32>
    %68 = vector.broadcast %67 : vector<1x64xf32> to vector<16x64xf32>
    %69 = arith.addf %66, %68 : vector<16x64xf32>
    %c0_15 = arith.constant 0 : index
    %c0_16 = arith.constant 0 : index
    %70 = vector.load %arg5[%c0_15, %c0_16] : memref<64x128xf32, #tpu.memory_space<vmem>>, vector<64x128xf32>
    %cst_17 = arith.constant dense<0.000000e+00> : vector<16x128xf32>
    %71 = tpu.matmul %69, %70, %cst_17 {dimension_numbers = #tpu.dot_dimension_numbers<[1], [0], [0], [1], [0, 0, 1, 1], [], []>} : vector<16x64xf32>, vector<64x128xf32>, vector<16x128xf32> -> vector<16x128xf32>
    %c0_18 = arith.constant 0 : index
    %c0_19 = arith.constant 0 : index
    %72 = vector.load %arg6[%c0_18, %c0_19] : memref<1x128xf32, #tpu.memory_space<vmem>>, vector<1x128xf32>
    %73 = vector.broadcast %72 : vector<1x128xf32> to vector<16x128xf32>
    %74 = arith.mulf %71, %73 : vector<16x128xf32>
    %c0_20 = arith.constant 0 : index
    %c0_21 = arith.constant 0 : index
    %75 = vector.load %arg7[%c0_20, %c0_21] : memref<1x128xf32, #tpu.memory_space<vmem>>, vector<1x128xf32>
    %76 = vector.broadcast %75 : vector<1x128xf32> to vector<16x128xf32>
    %77 = arith.addf %74, %76 : vector<16x128xf32>
    %cst_22 = arith.constant 0.000000e+00 : f32
    %78 = vector.broadcast %cst_22 : f32 to vector<16x128xf32>
    %79 = arith.maximumf %77, %78 : vector<16x128xf32>
    %c8_23 = arith.constant 8 : index
    %c128_24 = arith.constant 128 : index
    %80 = vector.load %arg24[%c8_23, %c128_24] : memref<26x272xf32, #tpu.memory_space<vmem>>, vector<16x128xf32>
    tpu.vector_store %arg24[%c8_23, %c128_24], %79 {strides = array<i32>} : memref<26x272xf32, #tpu.memory_space<vmem>>, vector<16x128xf32>,
    %c0_25 = arith.constant 0 : index
    %c0_26 = arith.constant 0 : index
    %81 = vector.load %arg24[%c0_25, %c0_26] : memref<26x272xf32, #tpu.memory_space<vmem>>, vector<26x272xf32>
    %c0_27 = arith.constant 0 : index
    %c0_28 = arith.constant 0 : index
    %c0_29 = arith.constant 0 : index
    %82 = vector.load %arg8[%c0_27, %c0_28, %c0_29] : memref<9x1x128xf32, #tpu.memory_space<vmem>>, vector<9x1x128xf32>
    %cst_30 = arith.constant 0.000000e+00 : f32
    %83 = vector.broadcast %cst_30 : f32 to vector<16x128xf32>
    %84 = vector.extract_strided_slice %81 {offsets = [7, 120], sizes = [16, 128], strides = [1, 1]} : vector<26x272xf32> to vector<16x128xf32>
    %85 = vector.extract_strided_slice %82 {offsets = [0, 0, 0], sizes = [1, 1, 128], strides = [1, 1, 1]} : vector<9x1x128xf32> to vector<1x1x128xf32>
    %86 = vector.shape_cast %85 : vector<1x1x128xf32> to vector<1x128xf32>
    %87 = vector.broadcast %86 : vector<1x128xf32> to vector<16x128xf32>
    %88 = arith.mulf %84, %87 : vector<16x128xf32>
    %89 = arith.addf %83, %88 : vector<16x128xf32>
    %90 = vector.extract_strided_slice %81 {offsets = [7, 128], sizes = [16, 128], strides = [1, 1]} : vector<26x272xf32> to vector<16x128xf32>
    %91 = vector.extract_strided_slice %82 {offsets = [1, 0, 0], sizes = [1, 1, 128], strides = [1, 1, 1]} : vector<9x1x128xf32> to vector<1x1x128xf32>
    %92 = vector.shape_cast %91 : vector<1x1x128xf32> to vector<1x128xf32>
    %93 = vector.broadcast %92 : vector<1x128xf32> to vector<16x128xf32>
    %94 = arith.mulf %90, %93 : vector<16x128xf32>
    %95 = arith.addf %89, %94 : vector<16x128xf32>
    %96 = vector.extract_strided_slice %81 {offsets = [7, 136], sizes = [16, 128], strides = [1, 1]} : vector<26x272xf32> to vector<16x128xf32>
    %97 = vector.extract_strided_slice %82 {offsets = [2, 0, 0], sizes = [1, 1, 128], strides = [1, 1, 1]} : vector<9x1x128xf32> to vector<1x1x128xf32>
    %98 = vector.shape_cast %97 : vector<1x1x128xf32> to vector<1x128xf32>
    %99 = vector.broadcast %98 : vector<1x128xf32> to vector<16x128xf32>
    %100 = arith.mulf %96, %99 : vector<16x128xf32>
    %101 = arith.addf %95, %100 : vector<16x128xf32>
    %102 = vector.extract_strided_slice %81 {offsets = [8, 120], sizes = [16, 128], strides = [1, 1]} : vector<26x272xf32> to vector<16x128xf32>
    %103 = vector.extract_strided_slice %82 {offsets = [3, 0, 0], sizes = [1, 1, 128], strides = [1, 1, 1]} : vector<9x1x128xf32> to vector<1x1x128xf32>
    %104 = vector.shape_cast %103 : vector<1x1x128xf32> to vector<1x128xf32>
    %105 = vector.broadcast %104 : vector<1x128xf32> to vector<16x128xf32>
    %106 = arith.mulf %102, %105 : vector<16x128xf32>
    %107 = arith.addf %101, %106 : vector<16x128xf32>
    %108 = vector.extract_strided_slice %81 {offsets = [8, 128], sizes = [16, 128], strides = [1, 1]} : vector<26x272xf32> to vector<16x128xf32>
    %109 = vector.extract_strided_slice %82 {offsets = [4, 0, 0], sizes = [1, 1, 128], strides = [1, 1, 1]} : vector<9x1x128xf32> to vector<1x1x128xf32>
    %110 = vector.shape_cast %109 : vector<1x1x128xf32> to vector<1x128xf32>
    %111 = vector.broadcast %110 : vector<1x128xf32> to vector<16x128xf32>
    %112 = arith.mulf %108, %111 : vector<16x128xf32>
    %113 = arith.addf %107, %112 : vector<16x128xf32>
    %114 = vector.extract_strided_slice %81 {offsets = [8, 136], sizes = [16, 128], strides = [1, 1]} : vector<26x272xf32> to vector<16x128xf32>
    %115 = vector.extract_strided_slice %82 {offsets = [5, 0, 0], sizes = [1, 1, 128], strides = [1, 1, 1]} : vector<9x1x128xf32> to vector<1x1x128xf32>
    %116 = vector.shape_cast %115 : vector<1x1x128xf32> to vector<1x128xf32>
    %117 = vector.broadcast %116 : vector<1x128xf32> to vector<16x128xf32>
    %118 = arith.mulf %114, %117 : vector<16x128xf32>
    %119 = arith.addf %113, %118 : vector<16x128xf32>
    %120 = vector.extract_strided_slice %81 {offsets = [9, 120], sizes = [16, 128], strides = [1, 1]} : vector<26x272xf32> to vector<16x128xf32>
    %121 = vector.extract_strided_slice %82 {offsets = [6, 0, 0], sizes = [1, 1, 128], strides = [1, 1, 1]} : vector<9x1x128xf32> to vector<1x1x128xf32>
    %122 = vector.shape_cast %121 : vector<1x1x128xf32> to vector<1x128xf32>
    %123 = vector.broadcast %122 : vector<1x128xf32> to vector<16x128xf32>
    %124 = arith.mulf %120, %123 : vector<16x128xf32>
    %125 = arith.addf %119, %124 : vector<16x128xf32>
    %126 = vector.extract_strided_slice %81 {offsets = [9, 128], sizes = [16, 128], strides = [1, 1]} : vector<26x272xf32> to vector<16x128xf32>
    %127 = vector.extract_strided_slice %82 {offsets = [7, 0, 0], sizes = [1, 1, 128], strides = [1, 1, 1]} : vector<9x1x128xf32> to vector<1x1x128xf32>
    %128 = vector.shape_cast %127 : vector<1x1x128xf32> to vector<1x128xf32>
    %129 = vector.broadcast %128 : vector<1x128xf32> to vector<16x128xf32>
    %130 = arith.mulf %126, %129 : vector<16x128xf32>
    %131 = arith.addf %125, %130 : vector<16x128xf32>
    %132 = vector.extract_strided_slice %81 {offsets = [9, 136], sizes = [16, 128], strides = [1, 1]} : vector<26x272xf32> to vector<16x128xf32>
    %133 = vector.extract_strided_slice %82 {offsets = [8, 0, 0], sizes = [1, 1, 128], strides = [1, 1, 1]} : vector<9x1x128xf32> to vector<1x1x128xf32>
    %134 = vector.shape_cast %133 : vector<1x1x128xf32> to vector<1x128xf32>
    %135 = vector.broadcast %134 : vector<1x128xf32> to vector<16x128xf32>
    %136 = arith.mulf %132, %135 : vector<16x128xf32>
    %137 = arith.addf %131, %136 : vector<16x128xf32>
    %c0_31 = arith.constant 0 : index
    %c0_32 = arith.constant 0 : index
    %138 = vector.load %arg9[%c0_31, %c0_32] : memref<1x128xf32, #tpu.memory_space<vmem>>, vector<1x128xf32>
    %139 = vector.broadcast %138 : vector<1x128xf32> to vector<16x128xf32>
    %140 = arith.mulf %137, %139 : vector<16x128xf32>
    %c0_33 = arith.constant 0 : index
    %c0_34 = arith.constant 0 : index
    %141 = vector.load %arg10[%c0_33, %c0_34] : memref<1x128xf32, #tpu.memory_space<vmem>>, vector<1x128xf32>
    %142 = vector.broadcast %141 : vector<1x128xf32> to vector<16x128xf32>
    %143 = arith.addf %140, %142 : vector<16x128xf32>
    %c0_35 = arith.constant 0 : index
    %c0_36 = arith.constant 0 : index
    %144 = vector.load %arg11[%c0_35, %c0_36] : memref<128x128xf32, #tpu.memory_space<vmem>>, vector<128x128xf32>
    %cst_37 = arith.constant dense<0.000000e+00> : vector<16x128xf32>
    %145 = tpu.matmul %143, %144, %cst_37 {dimension_numbers = #tpu.dot_dimension_numbers<[1], [0], [0], [1], [0, 0, 1, 1], [], []>} : vector<16x128xf32>, vector<128x128xf32>, vector<16x128xf32> -> vector<16x128xf32>
    %c0_38 = arith.constant 0 : index
    %c0_39 = arith.constant 0 : index
    %146 = vector.load %arg12[%c0_38, %c0_39] : memref<1x128xf32, #tpu.memory_space<vmem>>, vector<1x128xf32>
    %147 = vector.broadcast %146 : vector<1x128xf32> to vector<16x128xf32>
    %148 = arith.mulf %145, %147 : vector<16x128xf32>
    %c0_40 = arith.constant 0 : index
    %c0_41 = arith.constant 0 : index
    %149 = vector.load %arg13[%c0_40, %c0_41] : memref<1x128xf32, #tpu.memory_space<vmem>>, vector<1x128xf32>
    %150 = vector.broadcast %149 : vector<1x128xf32> to vector<16x128xf32>
    %151 = arith.addf %148, %150 : vector<16x128xf32>
    %cst_42 = arith.constant 0.000000e+00 : f32
    %152 = vector.broadcast %cst_42 : f32 to vector<16x128xf32>
    %153 = arith.maximumf %151, %152 : vector<16x128xf32>
    %c8_43 = arith.constant 8 : index
    %c128_44 = arith.constant 128 : index
    %154 = vector.load %arg24[%c8_43, %c128_44] : memref<26x272xf32, #tpu.memory_space<vmem>>, vector<16x128xf32>
    tpu.vector_store %arg24[%c8_43, %c128_44], %153 {strides = array<i32>} : memref<26x272xf32, #tpu.memory_space<vmem>>, vector<16x128xf32>,
    %c0_45 = arith.constant 0 : index
    %c0_46 = arith.constant 0 : index
    %155 = vector.load %arg24[%c0_45, %c0_46] : memref<26x272xf32, #tpu.memory_space<vmem>>, vector<26x272xf32>
    %c0_47 = arith.constant 0 : index
    %c0_48 = arith.constant 0 : index
    %c0_49 = arith.constant 0 : index
    %156 = vector.load %arg14[%c0_47, %c0_48, %c0_49] : memref<9x1x128xf32, #tpu.memory_space<vmem>>, vector<9x1x128xf32>
    %cst_50 = arith.constant 0.000000e+00 : f32
    %157 = vector.broadcast %cst_50 : f32 to vector<16x128xf32>
    %158 = vector.extract_strided_slice %155 {offsets = [7, 120], sizes = [16, 128], strides = [1, 1]} : vector<26x272xf32> to vector<16x128xf32>
    %159 = vector.extract_strided_slice %156 {offsets = [0, 0, 0], sizes = [1, 1, 128], strides = [1, 1, 1]} : vector<9x1x128xf32> to vector<1x1x128xf32>
    %160 = vector.shape_cast %159 : vector<1x1x128xf32> to vector<1x128xf32>
    %161 = vector.broadcast %160 : vector<1x128xf32> to vector<16x128xf32>
    %162 = arith.mulf %158, %161 : vector<16x128xf32>
    %163 = arith.addf %157, %162 : vector<16x128xf32>
    %164 = vector.extract_strided_slice %155 {offsets = [7, 128], sizes = [16, 128], strides = [1, 1]} : vector<26x272xf32> to vector<16x128xf32>
    %165 = vector.extract_strided_slice %156 {offsets = [1, 0, 0], sizes = [1, 1, 128], strides = [1, 1, 1]} : vector<9x1x128xf32> to vector<1x1x128xf32>
    %166 = vector.shape_cast %165 : vector<1x1x128xf32> to vector<1x128xf32>
    %167 = vector.broadcast %166 : vector<1x128xf32> to vector<16x128xf32>
    %168 = arith.mulf %164, %167 : vector<16x128xf32>
    %169 = arith.addf %163, %168 : vector<16x128xf32>
    %170 = vector.extract_strided_slice %155 {offsets = [7, 136], sizes = [16, 128], strides = [1, 1]} : vector<26x272xf32> to vector<16x128xf32>
    %171 = vector.extract_strided_slice %156 {offsets = [2, 0, 0], sizes = [1, 1, 128], strides = [1, 1, 1]} : vector<9x1x128xf32> to vector<1x1x128xf32>
    %172 = vector.shape_cast %171 : vector<1x1x128xf32> to vector<1x128xf32>
    %173 = vector.broadcast %172 : vector<1x128xf32> to vector<16x128xf32>
    %174 = arith.mulf %170, %173 : vector<16x128xf32>
    %175 = arith.addf %169, %174 : vector<16x128xf32>
    %176 = vector.extract_strided_slice %155 {offsets = [8, 120], sizes = [16, 128], strides = [1, 1]} : vector<26x272xf32> to vector<16x128xf32>
    %177 = vector.extract_strided_slice %156 {offsets = [3, 0, 0], sizes = [1, 1, 128], strides = [1, 1, 1]} : vector<9x1x128xf32> to vector<1x1x128xf32>
    %178 = vector.shape_cast %177 : vector<1x1x128xf32> to vector<1x128xf32>
    %179 = vector.broadcast %178 : vector<1x128xf32> to vector<16x128xf32>
    %180 = arith.mulf %176, %179 : vector<16x128xf32>
    %181 = arith.addf %175, %180 : vector<16x128xf32>
    %182 = vector.extract_strided_slice %155 {offsets = [8, 128], sizes = [16, 128], strides = [1, 1]} : vector<26x272xf32> to vector<16x128xf32>
    %183 = vector.extract_strided_slice %156 {offsets = [4, 0, 0], sizes = [1, 1, 128], strides = [1, 1, 1]} : vector<9x1x128xf32> to vector<1x1x128xf32>
    %184 = vector.shape_cast %183 : vector<1x1x128xf32> to vector<1x128xf32>
    %185 = vector.broadcast %184 : vector<1x128xf32> to vector<16x128xf32>
    %186 = arith.mulf %182, %185 : vector<16x128xf32>
    %187 = arith.addf %181, %186 : vector<16x128xf32>
    %188 = vector.extract_strided_slice %155 {offsets = [8, 136], sizes = [16, 128], strides = [1, 1]} : vector<26x272xf32> to vector<16x128xf32>
    %189 = vector.extract_strided_slice %156 {offsets = [5, 0, 0], sizes = [1, 1, 128], strides = [1, 1, 1]} : vector<9x1x128xf32> to vector<1x1x128xf32>
    %190 = vector.shape_cast %189 : vector<1x1x128xf32> to vector<1x128xf32>
    %191 = vector.broadcast %190 : vector<1x128xf32> to vector<16x128xf32>
    %192 = arith.mulf %188, %191 : vector<16x128xf32>
    %193 = arith.addf %187, %192 : vector<16x128xf32>
    %194 = vector.extract_strided_slice %155 {offsets = [9, 120], sizes = [16, 128], strides = [1, 1]} : vector<26x272xf32> to vector<16x128xf32>
    %195 = vector.extract_strided_slice %156 {offsets = [6, 0, 0], sizes = [1, 1, 128], strides = [1, 1, 1]} : vector<9x1x128xf32> to vector<1x1x128xf32>
    %196 = vector.shape_cast %195 : vector<1x1x128xf32> to vector<1x128xf32>
    %197 = vector.broadcast %196 : vector<1x128xf32> to vector<16x128xf32>
    %198 = arith.mulf %194, %197 : vector<16x128xf32>
    %199 = arith.addf %193, %198 : vector<16x128xf32>
    %200 = vector.extract_strided_slice %155 {offsets = [9, 128], sizes = [16, 128], strides = [1, 1]} : vector<26x272xf32> to vector<16x128xf32>
    %201 = vector.extract_strided_slice %156 {offsets = [7, 0, 0], sizes = [1, 1, 128], strides = [1, 1, 1]} : vector<9x1x128xf32> to vector<1x1x128xf32>
    %202 = vector.shape_cast %201 : vector<1x1x128xf32> to vector<1x128xf32>
    %203 = vector.broadcast %202 : vector<1x128xf32> to vector<16x128xf32>
    %204 = arith.mulf %200, %203 : vector<16x128xf32>
    %205 = arith.addf %199, %204 : vector<16x128xf32>
    %206 = vector.extract_strided_slice %155 {offsets = [9, 136], sizes = [16, 128], strides = [1, 1]} : vector<26x272xf32> to vector<16x128xf32>
    %207 = vector.extract_strided_slice %156 {offsets = [8, 0, 0], sizes = [1, 1, 128], strides = [1, 1, 1]} : vector<9x1x128xf32> to vector<1x1x128xf32>
    %208 = vector.shape_cast %207 : vector<1x1x128xf32> to vector<1x128xf32>
    %209 = vector.broadcast %208 : vector<1x128xf32> to vector<16x128xf32>
    %210 = arith.mulf %206, %209 : vector<16x128xf32>
    %211 = arith.addf %205, %210 : vector<16x128xf32>
    %c0_51 = arith.constant 0 : index
    %c0_52 = arith.constant 0 : index
    %212 = vector.load %arg15[%c0_51, %c0_52] : memref<1x128xf32, #tpu.memory_space<vmem>>, vector<1x128xf32>
    %213 = vector.broadcast %212 : vector<1x128xf32> to vector<16x128xf32>
    %214 = arith.mulf %211, %213 : vector<16x128xf32>
    %c0_53 = arith.constant 0 : index
    %c0_54 = arith.constant 0 : index
    %215 = vector.load %arg16[%c0_53, %c0_54] : memref<1x128xf32, #tpu.memory_space<vmem>>, vector<1x128xf32>
    %216 = vector.broadcast %215 : vector<1x128xf32> to vector<16x128xf32>
    %217 = arith.addf %214, %216 : vector<16x128xf32>
    %c0_55 = arith.constant 0 : index
    %c0_56 = arith.constant 0 : index
    %218 = vector.load %arg17[%c0_55, %c0_56] : memref<128x128xf32, #tpu.memory_space<vmem>>, vector<128x128xf32>
    %cst_57 = arith.constant dense<0.000000e+00> : vector<16x128xf32>
    %219 = tpu.matmul %217, %218, %cst_57 {dimension_numbers = #tpu.dot_dimension_numbers<[1], [0], [0], [1], [0, 0, 1, 1], [], []>} : vector<16x128xf32>, vector<128x128xf32>, vector<16x128xf32> -> vector<16x128xf32>
    %c0_58 = arith.constant 0 : index
    %c0_59 = arith.constant 0 : index
    %220 = vector.load %arg18[%c0_58, %c0_59] : memref<1x128xf32, #tpu.memory_space<vmem>>, vector<1x128xf32>
    %221 = vector.broadcast %220 : vector<1x128xf32> to vector<16x128xf32>
    %222 = arith.mulf %219, %221 : vector<16x128xf32>
    %c0_60 = arith.constant 0 : index
    %c0_61 = arith.constant 0 : index
    %223 = vector.load %arg19[%c0_60, %c0_61] : memref<1x128xf32, #tpu.memory_space<vmem>>, vector<1x128xf32>
    %224 = vector.broadcast %223 : vector<1x128xf32> to vector<16x128xf32>
    %225 = arith.addf %222, %224 : vector<16x128xf32>
    %c0_62 = arith.constant 0 : index
    %c0_63 = arith.constant 0 : index
    %226 = vector.load %arg20[%c0_62, %c0_63] : memref<64x128xf32, #tpu.memory_space<vmem>>, vector<64x128xf32>
    %cst_64 = arith.constant dense<0.000000e+00> : vector<16x128xf32>
    %227 = tpu.matmul %3, %226, %cst_64 {dimension_numbers = #tpu.dot_dimension_numbers<[1], [0], [0], [1], [0, 0, 1, 1], [], []>} : vector<16x64xf32>, vector<64x128xf32>, vector<16x128xf32> -> vector<16x128xf32>
    %c0_65 = arith.constant 0 : index
    %c0_66 = arith.constant 0 : index
    %228 = vector.load %arg21[%c0_65, %c0_66] : memref<1x128xf32, #tpu.memory_space<vmem>>, vector<1x128xf32>
    %229 = vector.broadcast %228 : vector<1x128xf32> to vector<16x128xf32>
    %230 = arith.mulf %227, %229 : vector<16x128xf32>
    %c0_67 = arith.constant 0 : index
    %c0_68 = arith.constant 0 : index
    %231 = vector.load %arg22[%c0_67, %c0_68] : memref<1x128xf32, #tpu.memory_space<vmem>>, vector<1x128xf32>
    %232 = vector.broadcast %231 : vector<1x128xf32> to vector<16x128xf32>
    %233 = arith.addf %230, %232 : vector<16x128xf32>
    %234 = arith.addf %225, %233 : vector<16x128xf32>
    %c0_69 = arith.constant 0 : index
    %c0_70 = arith.constant 0 : index
    %c0_71 = arith.constant 0 : index
    %235 = vector.load %arg23[%c0_69, %c0_70, %c0_71] : memref<1x16x128xf32, #tpu.memory_space<vmem>>, vector<1x16x128xf32>
    %236 = vector.shape_cast %235 : vector<1x16x128xf32> to vector<16x128xf32>
    %237 = vector.shape_cast %234 : vector<16x128xf32> to vector<1x16x128xf32>
    tpu.vector_store %arg23[%c0_69, %c0_70, %c0_71], %237 {strides = array<i32>} : memref<1x16x128xf32, #tpu.memory_space<vmem>>, vector<1x16x128xf32>,
    return
  }
  func.func @transform_0(%arg0: i32) -> (i32, i32, i32) {
    %c0_i32 = arith.constant 0 : i32
    %c0_i32_0 = arith.constant 0 : i32
    %c0_i32_1 = arith.constant 0 : i32
    return %arg0, %c0_i32, %c0_i32_0 : i32, i32, i32
  }
  func.func @transform_1(%arg0: i32) -> (i32, i32, i32) {
    %c0_i32 = arith.constant 0 : i32
    %c0_i32_0 = arith.constant 0 : i32
    %c0_i32_1 = arith.constant 0 : i32
    %c0_i32_2 = arith.constant 0 : i32
    return %c0_i32, %c0_i32_0, %c0_i32_1 : i32, i32, i32
  }
  func.func @transform_2(%arg0: i32) -> (i32, i32) {
    %c0_i32 = arith.constant 0 : i32
    %c0_i32_0 = arith.constant 0 : i32
    %c0_i32_1 = arith.constant 0 : i32
    return %c0_i32, %c0_i32_0 : i32, i32
  }
  func.func @transform_3(%arg0: i32) -> (i32, i32) {
    %c0_i32 = arith.constant 0 : i32
    %c0_i32_0 = arith.constant 0 : i32
    %c0_i32_1 = arith.constant 0 : i32
    return %c0_i32, %c0_i32_0 : i32, i32
  }
  func.func @transform_4(%arg0: i32) -> (i32, i32) {
    %c0_i32 = arith.constant 0 : i32
    %c0_i32_0 = arith.constant 0 : i32
    %c0_i32_1 = arith.constant 0 : i32
    return %c0_i32, %c0_i32_0 : i32, i32
  }
  func.func @transform_5(%arg0: i32) -> (i32, i32) {
    %c0_i32 = arith.constant 0 : i32
    %c0_i32_0 = arith.constant 0 : i32
    %c0_i32_1 = arith.constant 0 : i32
    return %c0_i32, %c0_i32_0 : i32, i32
  }
  func.func @transform_6(%arg0: i32) -> (i32, i32) {
    %c0_i32 = arith.constant 0 : i32
    %c0_i32_0 = arith.constant 0 : i32
    %c0_i32_1 = arith.constant 0 : i32
    return %c0_i32, %c0_i32_0 : i32, i32
  }
  func.func @transform_7(%arg0: i32) -> (i32, i32, i32) {
    %c0_i32 = arith.constant 0 : i32
    %c0_i32_0 = arith.constant 0 : i32
    %c0_i32_1 = arith.constant 0 : i32
    %c0_i32_2 = arith.constant 0 : i32
    return %c0_i32, %c0_i32_0, %c0_i32_1 : i32, i32, i32
  }
  func.func @transform_8(%arg0: i32) -> (i32, i32) {
    %c0_i32 = arith.constant 0 : i32
    %c0_i32_0 = arith.constant 0 : i32
    %c0_i32_1 = arith.constant 0 : i32
    return %c0_i32, %c0_i32_0 : i32, i32
  }
  func.func @transform_9(%arg0: i32) -> (i32, i32) {
    %c0_i32 = arith.constant 0 : i32
    %c0_i32_0 = arith.constant 0 : i32
    %c0_i32_1 = arith.constant 0 : i32
    return %c0_i32, %c0_i32_0 : i32, i32
  }
  func.func @transform_10(%arg0: i32) -> (i32, i32) {
    %c0_i32 = arith.constant 0 : i32
    %c0_i32_0 = arith.constant 0 : i32
    %c0_i32_1 = arith.constant 0 : i32
    return %c0_i32, %c0_i32_0 : i32, i32
  }
  func.func @transform_11(%arg0: i32) -> (i32, i32) {
    %c0_i32 = arith.constant 0 : i32
    %c0_i32_0 = arith.constant 0 : i32
    %c0_i32_1 = arith.constant 0 : i32
    return %c0_i32, %c0_i32_0 : i32, i32
  }
  func.func @transform_12(%arg0: i32) -> (i32, i32) {
    %c0_i32 = arith.constant 0 : i32
    %c0_i32_0 = arith.constant 0 : i32
    %c0_i32_1 = arith.constant 0 : i32
    return %c0_i32, %c0_i32_0 : i32, i32
  }
  func.func @transform_13(%arg0: i32) -> (i32, i32, i32) {
    %c0_i32 = arith.constant 0 : i32
    %c0_i32_0 = arith.constant 0 : i32
    %c0_i32_1 = arith.constant 0 : i32
    %c0_i32_2 = arith.constant 0 : i32
    return %c0_i32, %c0_i32_0, %c0_i32_1 : i32, i32, i32
  }
  func.func @transform_14(%arg0: i32) -> (i32, i32) {
    %c0_i32 = arith.constant 0 : i32
    %c0_i32_0 = arith.constant 0 : i32
    %c0_i32_1 = arith.constant 0 : i32
    return %c0_i32, %c0_i32_0 : i32, i32
  }
  func.func @transform_15(%arg0: i32) -> (i32, i32) {
    %c0_i32 = arith.constant 0 : i32
    %c0_i32_0 = arith.constant 0 : i32
    %c0_i32_1 = arith.constant 0 : i32
    return %c0_i32, %c0_i32_0 : i32, i32
  }
  func.func @transform_16(%arg0: i32) -> (i32, i32) {
    %c0_i32 = arith.constant 0 : i32
    %c0_i32_0 = arith.constant 0 : i32
    %c0_i32_1 = arith.constant 0 : i32
    return %c0_i32, %c0_i32_0 : i32, i32
  }
  func.func @transform_17(%arg0: i32) -> (i32, i32) {
    %c0_i32 = arith.constant 0 : i32
    %c0_i32_0 = arith.constant 0 : i32
    %c0_i32_1 = arith.constant 0 : i32
    return %c0_i32, %c0_i32_0 : i32, i32
  }
  func.func @transform_18(%arg0: i32) -> (i32, i32) {
    %c0_i32 = arith.constant 0 : i32
    %c0_i32_0 = arith.constant 0 : i32
    %c0_i32_1 = arith.constant 0 : i32
    return %c0_i32, %c0_i32_0 : i32, i32
  }
  func.func @transform_19(%arg0: i32) -> (i32, i32) {
    %c0_i32 = arith.constant 0 : i32
    %c0_i32_0 = arith.constant 0 : i32
    %c0_i32_1 = arith.constant 0 : i32
    return %c0_i32, %c0_i32_0 : i32, i32
  }
  func.func @transform_20(%arg0: i32) -> (i32, i32) {
    %c0_i32 = arith.constant 0 : i32
    %c0_i32_0 = arith.constant 0 : i32
    %c0_i32_1 = arith.constant 0 : i32
    return %c0_i32, %c0_i32_0 : i32, i32
  }
  func.func @transform_21(%arg0: i32) -> (i32, i32) {
    %c0_i32 = arith.constant 0 : i32
    %c0_i32_0 = arith.constant 0 : i32
    %c0_i32_1 = arith.constant 0 : i32
    return %c0_i32, %c0_i32_0 : i32, i32
  }
  func.func @transform_22(%arg0: i32) -> (i32, i32, i32) {
    %c0_i32 = arith.constant 0 : i32
    %c0_i32_0 = arith.constant 0 : i32
    %c0_i32_1 = arith.constant 0 : i32
    return %arg0, %c0_i32, %c0_i32_0 : i32, i32, i32
  }
}

</mosaic_0001>

<bundles_post_ra>
// kernel: tpu_custom_call.1
= control target key start
LH: loop header
LB: loop body
LE: loop exit
PB: predicated region body
PF: predicated region fallthrough
CT: control target
= control target key end

     0   :  { %s4792_s0 = inlined_call_operand.hbm [shape: f32[2,16,64], index: 0, kind: input, shape index: {}]   ;;  %s4793_s1 = inlined_call_operand.hbm [shape: f32[9,1,64], index: 1, kind: input, shape index: {}]   ;;  %s4794_s2 = inlined_call_operand.vmem [shape: f32[1,64], index: 2, kind: input, shape index: {}]   ;;  %s4795_s3 = inlined_call_operand.vmem [shape: f32[1,64], index: 3, kind: input, shape index: {}]   ;;  %s4796_s4 = inlined_call_operand.hbm [shape: f32[64,128], index: 4, kind: input, shape index: {}]   ;;  %s4797_s5 = inlined_call_operand.vmem [shape: f32[1,128], index: 5, kind: input, shape index: {}]   ;;  %s4798_s6 = inlined_call_operand.vmem [shape: f32[1,128], index: 6, kind: input, shape index: {}]   ;;  %s4799_s7 = inlined_call_operand.hbm [shape: f32[9,1,128], index: 7, kind: input, shape index: {}]   ;;  %s4800_s8 = inlined_call_operand.vmem [shape: f32[1,128], index: 8, kind: input, shape index: {}]   ;;  %s4801_s9 = inlined_call_operand.vmem [shape: f32[1,128], index: 9, kind: input, shape index: {}]   ;;  %s4802_s10 = inlined_call_operand.hbm [shape: f32[128,128], index: 10, kind: input, shape index: {}]   ;;  %s4803_s11 = inlined_call_operand.vmem [shape: f32[1,128], index: 11, kind: input, shape index: {}]   ;;  %s4804_s12 = inlined_call_operand.hbm [shape: f32[1,128], index: 12, kind: input, shape index: {}]   ;;  %s4805_s13 = inlined_call_operand.hbm [shape: f32[9,1,128], index: 13, kind: input, shape index: {}]   ;;  %s4806_s14 = inlined_call_operand.hbm [shape: f32[1,128], index: 14, kind: input, shape index: {}]   ;;  %s4807_s15 = inlined_call_operand.hbm [shape: f32[1,128], index: 15, kind: input, shape index: {}]   ;;  %s4808_s16 = inlined_call_operand.hbm [shape: f32[128,128], index: 16, kind: input, shape index: {}]   ;;  %s4809_s17 = inlined_call_operand.hbm [shape: f32[1,128], index: 17, kind: input, shape index: {}]   ;;  %s4810_s18 = inlined_call_operand.hbm [shape: f32[1,128], index: 18, kind: input, shape index: {}]   ;;  %s4811_s19 = inlined_call_operand.vmem [shape: f32[64,128], index: 19, kind: input, shape index: {}]   ;;  %s4812_s20 = inlined_call_operand.vmem [shape: f32[1,128], index: 20, kind: input, shape index: {}]   ;;  %s4813_s21 = inlined_call_operand.vmem [shape: f32[1,128], index: 21, kind: input, shape index: {}]   ;;  %s4814_s22 = inlined_call_operand.hbm [shape: f32[2,16,128], index: 22, kind: output, shape index: {}]  }
   0x1   :  { %4834 = sst [smem:[#allocation33_spill]] %s4792_s0 }
   0x2   :  { %4835 = sst [smem:[#allocation34_spill]] %s4793_s1 }
   0x3   :  { %4836 = sst [smem:[#allocation35_spill]] %s4794_s2 }
   0x4   :  { %4837 = sst [smem:[#allocation36_spill]] %s4795_s3 }
   0x5   :  { %4838 = sst [smem:[#allocation37_spill]] %s4796_s4 }
   0x6   :  { %4839 = sst [smem:[#allocation38_spill]] %s4797_s5 }
   0x7   :  { %4840 = sst [smem:[#allocation39_spill]] %s4798_s6 }
   0x8   :  { %4841 = sst [smem:[#allocation40_spill]] %s4799_s7 }
   0x9   :  { %4842 = sst [smem:[#allocation41_spill]] %s4800_s8 }
   0xa   :  { %4843 = sst [smem:[#allocation42_spill]] %s4801_s9 }
   0xb   :  { %4844 = sst [smem:[#allocation43_spill]] %s4803_s11 }
   0xc   :  { %4845 = sst [smem:[#allocation44_spill]] %s4811_s19 }
   0xd   :  { %4846 = sst [smem:[#allocation45_spill]] %s4812_s20 }
   0xe   :  { %4847 = sst [smem:[#allocation46_spill]] %s4813_s21 }
   0xf   :  { %4848 = sst [smem:[#allocation47_spill]] %s4814_s22 }
  0x10   :  { %27 = vsyncpa [#allocation4], 0 }
  0x11   :  { %29 = vsyncpa [#allocation4 + $0x1], 0 }
  0x12   :  { %30 = vsyncpa [#allocation7], 0 }
  0x13   :  { %31 = vsyncpa [#allocation10], 0 }
  0x14   :  { %32 = vsyncpa [#allocation13], 0 }
  0x15   :  { %33 = vsyncpa [#allocation16], 0 }
  0x16   :  { %34 = vsyncpa [#allocation19], 0 }
  0x17   :  { %35 = vsyncpa [#allocation22], 0 }
  0x18   :  { %36 = vsyncpa [#allocation5], 0 }
  0x19   :  { %38 = vsyncpa [#allocation5 + $0x1], 0  ;;  %s3795_s3 = smov 0   ;;  %s3797_s28 = smov 0  }
  0x1a   :  { %s3799_s29 = smov 0   ;;  %s3801_s30 = smov 0  }
  0x1b LB: > { %s3656_s4 = smov [#allocation6]   ;;  %s3816_s23 = sadd.s32 4294967295, %s3654_s30   ;;  %s3654_s30 = sphi %s3801_s30, %s4899_s30   ;;  %s3650_s29 = sphi %s3799_s29, %s4898_s29   ;;  %s3646_s28 = sphi %s3797_s28, %s4897_s28   ;;  %s3642_s3 = sphi %s3795_s3, %s4896_s3  }
  0x1c   : > { %s554_s0 = sshll.u32 %s3656_s4, 4  ;;  %p2693_p0 = scmp.ge.s32.totalorder %s3654_s30, 1  ;;  %s3821_s0 = int_to_ptr.vmem [resolvable:$true] %s554_s0 }
  0x1d   : > { %p4821_p1 = scmp.eq.s32.totalorder %s3816_s23, 0  ;;  %p542_p2 = scmp.lt.s32.totalorder %s3654_s30, 3 }
  0x1e   : > { %s3657_s5 = smov [#allocation9]   ;;  %s3658_s25 = smov [#allocation12]  }
  0x1f   : > { %p3823_p3 = pnand %p2693_p0, %p542_p2  ;;  %s592_s24 = sshll.u32 %s3657_s5, 4  ;;  %s3836_s24 = int_to_ptr.vmem [resolvable:$true] %s592_s24 }
  0x20   : > { %s628_s26 = sshll.u32 %s3658_s25, 4  ;;  %s4852_s4 = sld [smem:[#allocation34_spill]]  ;;  %s3838_s26 = int_to_ptr.vmem [resolvable:$true] %s628_s26 }
  0x21   : > { %s4849_s1 = scalar_select %p3823_p3, 1, 0 }
  0x22   : > { %p3083_p5 = pneg %p3823_p3 }
  0x23   : > { %4850 = sst [smem:[#allocation32_spill]] %s4849_s1 }
  0x24   : > { %p3832_p6 = pnand %p3083_p5, %p4821_p1 }
  0x26   : > { %s3226_s22 = scalar_lea.hbm %s4852_s4, 144  ;;  %p3848_p8 = pneg %p3832_p6 }
  0x27   : > { %p3227_p7 = scmp.ne.s32.totalorder %s4852_s4, %s3226_s22  ;;  %p3233_p11 = scmp.lt.u32.totalorder %s3226_s22, %s4852_s4 }
  0x29   : > { %p3229_p9 = pnand %p3848_p8, %p3227_p7 }
  0x2b   : > { %p3230_p10 = pneg %p3229_p9 }
  0x2d   : > { %p3235_p12 = pnand %p3233_p11, %p3230_p10 }
  0x2f   : > { %3238 = shalt.err (!%p3235_p12)
}
  0x30   : > { %s3239_s20 = scalar_lea.vmem %s3821_s0, 144  ;;  %s3246_s21 = scalar_lea.vmem %s3821_s0, 160 }
  0x31   : > { %p3240_p13 = scmp.ne.s32.totalorder %s3821_s0, %s3239_s20  ;;  %p3247_p5 = scmp.lt.s32.totalorder %s3821_s0, %s3821_s0 }
  0x32   : > { %p3248_p7 = scmp.lt.s32.totalorder %s3246_s21, %s3239_s20 }
  0x33   : > { %p3242_p0 = pnand %p3240_p13, %p3848_p8 }
  0x34   : > { %p3249_p9 = por %p3248_p7, %p3247_p5 }
  0x35   : > { %p3243_p2 = pneg %p3242_p0 }
  0x37   : > { %p3250_p4 = pnand %p3249_p9, %p3243_p2 }
  0x39   : > { %3253 = shalt.err (!%p3250_p4)
}
  0x3a   : > { %s4823_s19 = smov 16   ;;  %s4824_s22 = smov 1  }
  0x3b   : > { %3086 = dma.hbm_to_vmem [thread:$0]  (!%p3832_p6), %s4852_s4, 144, %s3821_s0, [#allocation7], %s4823_s19, %s4823_s19, %s4824_s22  }
  0x3c   : > { %s4854_s7 = sld [smem:[#allocation40_spill]] }
  0x42   : > { %s3254_s20 = scalar_lea.hbm %s4854_s7, 144 }
  0x43   : > { %p3255_p4 = scmp.ne.s32.totalorder %s4854_s7, %s3254_s20  ;;  %p3261_p12 = scmp.lt.u32.totalorder %s3254_s20, %s4854_s7 }
  0x45   : > { %p3257_p10 = pnand %p3255_p4, %p3848_p8 }
  0x47   : > { %p3258_p11 = pneg %p3257_p10 }
  0x49   : > { %p3263_p13 = pnand %p3261_p12, %p3258_p11 }
  0x4b   : > { %3266 = shalt.err (!%p3263_p13)
}
  0x4c   : > { %s3267_s11 = scalar_lea.vmem %s3836_s24, 144  ;;  %s3274_s9 = scalar_lea.vmem %s3836_s24, 160 }
  0x4d   : > { %p3268_p0 = scmp.ne.s32.totalorder %s3836_s24, %s3267_s11  ;;  %p3275_p7 = scmp.lt.s32.totalorder %s3836_s24, %s3836_s24 }
  0x4e   : > { %p3276_p9 = scmp.lt.s32.totalorder %s3274_s9, %s3267_s11 }
  0x4f   : > { %p3270_p2 = pnand %p3268_p0, %p3848_p8 }
  0x50   : > { %p3277_p4 = por %p3276_p9, %p3275_p7 }
  0x51   : > { %p3271_p5 = pneg %p3270_p2 }
  0x53   : > { %p3278_p10 = pnand %p3277_p4, %p3271_p5 }
  0x55   : > { %3281 = shalt.err (!%p3278_p10)
}
  0x56   : > { %3092 = dma.hbm_to_vmem [thread:$0]  (!%p3832_p6), %s4854_s7, 144, %s3836_s24, [#allocation10], %s4823_s19, %s4823_s19, %s4824_s22  }
  0x57   : > { %s3282_s27 = scalar_lea.hbm %s4804_s12, 16 }
  0x58   : > { %p3283_p11 = scmp.ne.s32.totalorder %s4804_s12, %s3282_s27  ;;  %p3289_p0 = scmp.lt.u32.totalorder %s3282_s27, %s4804_s12 }
  0x5a   : > { %p3285_p12 = pnand %p3283_p11, %p3848_p8 }
  0x5c   : > { %p3286_p13 = pneg %p3285_p12 }
  0x5e   : > { %p3291_p2 = pnand %p3289_p0, %p3286_p13 }
  0x60   : > { %3294 = shalt.err (!%p3291_p2)
}
  0x61   : > { %s3295_s24 = scalar_lea.vmem %s3838_s26, 16  ;;  %s3302_s9 = scalar_lea.vmem %s3838_s26, 32 }
  0x62   : > { %p3296_p5 = scmp.ne.s32.totalorder %s3838_s26, %s3295_s24  ;;  %p3303_p4 = scmp.lt.s32.totalorder %s3838_s26, %s3838_s26 }
  0x63   : > { %p3304_p10 = scmp.lt.s32.totalorder %s3302_s9, %s3295_s24 }
  0x64   : > { %p3298_p7 = pnand %p3296_p5, %p3848_p8 }
  0x65   : > { %p3305_p11 = por %p3304_p10, %p3303_p4 }
  0x66   : > { %p3299_p9 = pneg %p3298_p7 }
  0x68   : > { %p3306_p12 = pnand %p3305_p11, %p3299_p9 }
  0x6a   : > { %3309 = shalt.err (!%p3306_p12)
}
  0x6b   : > { %3098 = dma.hbm_to_vmem [thread:$0]  (!%p3832_p6), %s4804_s12, 16, %s3838_s26, [#allocation13]  }
  0x6c   : > { %s3661_s1 = smov [#allocation15]   ;;  %s3310_s20 = scalar_lea.hbm %s4806_s14, 16 }
  0x6d   : > { %s652_s2 = sshll.u32 %s3661_s1, 4  ;;  %p3311_p13 = scmp.ne.s32.totalorder %s4806_s14, %s3310_s20  ;;  %s653_s2 = int_to_ptr.vmem [resolvable:$true] %s652_s2 }
  0x6e   : > { %p3317_p5 = scmp.lt.u32.totalorder %s3310_s20, %s4806_s14 }
  0x6f   : > { %p3313_p0 = pnand %p3311_p13, %p3848_p8 }
  0x71   : > { %p3314_p2 = pneg %p3313_p0 }
  0x73   : > { %p3319_p7 = pnand %p3317_p5, %p3314_p2 }
  0x75   : > { %3322 = shalt.err (!%p3319_p7)
}
  0x76   : > { %s3323_s26 = scalar_lea.vmem %s653_s2, 16  ;;  %s3330_s8 = scalar_lea.vmem %s653_s2, 32 }
  0x77   : > { %p3324_p9 = scmp.ne.s32.totalorder %s653_s2, %s3323_s26  ;;  %p3331_p11 = scmp.lt.s32.totalorder %s653_s2, %s653_s2 }
  0x78   : > { %p3332_p12 = scmp.lt.s32.totalorder %s3330_s8, %s3323_s26 }
  0x79   : > { %p3326_p4 = pnand %p3324_p9, %p3848_p8 }
  0x7a   : > { %p3333_p1 = por %p3332_p12, %p3331_p11 }
  0x7b   : > { %p3327_p10 = pneg %p3326_p4 }
  0x7d   : > { %p3334_p3 = pnand %p3333_p1, %p3327_p10 }
  0x7f   : > { %3337 = shalt.err (!%p3334_p3)
}
  0x80   : > { %3104 = dma.hbm_to_vmem [thread:$0]  (!%p3832_p6), %s4806_s14, 16, %s653_s2, [#allocation16]  }
  0x81   : > { %s3662_s27 = smov [#allocation18]   ;;  %s3663_s20 = smov [#allocation8]  }
  0x82   : > { %s673_s25 = sshll.u32 %s3662_s27, 4  ;;  %s573_s21 = sshll.u32 %s3663_s20, 4  ;;  %s674_s25 = int_to_ptr.vmem [resolvable:$true] %s673_s25  ;;  %s3942_s21 = int_to_ptr.vmem [resolvable:$true] %s573_s21 }
  0x83   : > { %s3338_s9 = scalar_lea.hbm %s4808_s16, 2048 }
  0x84   : > { %p3339_p1 = scmp.ne.s32.totalorder %s4808_s16, %s3338_s9  ;;  %p3345_p0 = scmp.lt.u32.totalorder %s3338_s9, %s4808_s16 }
  0x86   : > { %p3341_p3 = pnand %p3339_p1, %p3848_p8 }
  0x88   : > { %p3342_p13 = pneg %p3341_p3 }
  0x8a   : > { %p3347_p2 = pnand %p3345_p0, %p3342_p13 }
  0x8c   : > { %3350 = shalt.err (!%p3347_p2)
}
  0x8d   : > { %s3351_s1 = scalar_lea.vmem %s674_s25, 2048  ;;  %p3359_p4 = scmp.lt.s32.totalorder %s674_s25, %s674_s25 }
  0x8e   : > { %p3352_p5 = scmp.ne.s32.totalorder %s674_s25, %s3351_s1  ;;  %p3360_p10 = scmp.lt.s32.totalorder %s3351_s1, %s3351_s1 }
  0x90   : > { %p3354_p7 = pnand %p3352_p5, %p3848_p8  ;;  %p3361_p11 = por %p3360_p10, %p3359_p4 }
  0x92   : > { %p3355_p9 = pneg %p3354_p7 }
  0x94   : > { %p3362_p12 = pnand %p3361_p11, %p3355_p9 }
  0x96   : > { %3365 = shalt.err (!%p3362_p12)
}
  0x97   : > { %s4826_s27 = smov 128   ;;  %s4827_s20 = smov 8  }
  0x98   : > { %3110 = dma.hbm_to_vmem [thread:$0]  (!%p3832_p6), %s4808_s16, 2048, %s674_s25, [#allocation19], %s4826_s27, %s4826_s27, %s4827_s20  }
  0x99   : > { %s4855_s8 = sld [smem:[#allocation37_spill]] }
  0x9f   : > { %s3366_s0 = scalar_lea.hbm %s4855_s8, 1024 }
  0xa0   : > { %p3367_p1 = scmp.ne.s32.totalorder %s4855_s8, %s3366_s0  ;;  %p3373_p0 = scmp.lt.u32.totalorder %s3366_s0, %s4855_s8 }
  0xa2   : > { %p3369_p3 = pnand %p3367_p1, %p3848_p8 }
  0xa4   : > { %p3370_p13 = pneg %p3369_p3 }
  0xa6   : > { %p3375_p2 = pnand %p3373_p0, %p3370_p13 }
  0xa8   : > { %3378 = shalt.err (!%p3375_p2)
}
  0xa9   : > { %s3379_s25 = scalar_lea.vmem %s3942_s21, 1024  ;;  %p3387_p4 = scmp.lt.s32.totalorder %s3942_s21, %s3942_s21 }
  0xaa   : > { %p3380_p5 = scmp.ne.s32.totalorder %s3942_s21, %s3379_s25  ;;  %p3388_p10 = scmp.lt.s32.totalorder %s3379_s25, %s3379_s25 }
  0xac   : > { %p3382_p7 = pnand %p3380_p5, %p3848_p8  ;;  %p3389_p11 = por %p3388_p10, %p3387_p4 }
  0xae   : > { %p3383_p9 = pneg %p3382_p7 }
  0xb0   : > { %p3390_p12 = pnand %p3389_p11, %p3383_p9 }
  0xb2   : > { %3393 = shalt.err (!%p3390_p12)
}
  0xb3   : > { %3089 = dma.hbm_to_vmem [thread:$0]  (!%p3832_p6), %s4855_s8, 1024, %s3942_s21, [#allocation7], %s4826_s27, %s4826_s27, %s4827_s20  }
  0xb4   : > { %s3666_s11 = smov [#allocation11]   ;;  %s3667_s9 = smov [#allocation14]  }
  0xb5   : > { %s611_s24 = sshll.u32 %s3666_s11, 4  ;;  %s638_s26 = sshll.u32 %s3667_s9, 4  ;;  %s612_s24 = int_to_ptr.vmem [resolvable:$true] %s611_s24  ;;  %s3991_s26 = int_to_ptr.vmem [resolvable:$true] %s638_s26 }
  0xb6   : > { %s3394_s1 = scalar_lea.hbm %s4802_s10, 2048 }
  0xb7   : > { %p3395_p1 = scmp.ne.s32.totalorder %s4802_s10, %s3394_s1  ;;  %p3401_p0 = scmp.lt.u32.totalorder %s3394_s1, %s4802_s10 }
  0xb9   : > { %p3397_p3 = pnand %p3395_p1, %p3848_p8 }
  0xbb   : > { %p3398_p13 = pneg %p3397_p3 }
  0xbd   : > { %p3403_p2 = pnand %p3401_p0, %p3398_p13 }
  0xbf   : > { %3406 = shalt.err (!%p3403_p2)
}
  0xc0   : > { %s3407_s22 = scalar_lea.vmem %s612_s24, 2048  ;;  %p3415_p4 = scmp.lt.s32.totalorder %s612_s24, %s612_s24 }
  0xc1   : > { %p3408_p5 = scmp.ne.s32.totalorder %s612_s24, %s3407_s22  ;;  %p3416_p10 = scmp.lt.s32.totalorder %s3407_s22, %s3407_s22 }
  0xc3   : > { %p3410_p7 = pnand %p3408_p5, %p3848_p8  ;;  %p3417_p11 = por %p3416_p10, %p3415_p4 }
  0xc5   : > { %p3411_p9 = pneg %p3410_p7 }
  0xc7   : > { %p3418_p12 = pnand %p3417_p11, %p3411_p9 }
  0xc9   : > { %3421 = shalt.err (!%p3418_p12)
}
  0xca   : > { %3095 = dma.hbm_to_vmem [thread:$0]  (!%p3832_p6), %s4802_s10, 2048, %s612_s24, [#allocation10], %s4826_s27, %s4826_s27, %s4827_s20  }
  0xcb   : > { %s3422_s2 = scalar_lea.hbm %s4805_s13, 144 }
  0xcc   : > { %p3423_p1 = scmp.ne.s32.totalorder %s4805_s13, %s3422_s2  ;;  %p3429_p0 = scmp.lt.u32.totalorder %s3422_s2, %s4805_s13 }
  0xce   : > { %p3425_p3 = pnand %p3423_p1, %p3848_p8 }
  0xd0   : > { %p3426_p13 = pneg %p3425_p3 }
  0xd2   : > { %p3431_p2 = pnand %p3429_p0, %p3426_p13 }
  0xd4   : > { %3434 = shalt.err (!%p3431_p2)
}
  0xd5   : > { %s3435_s24 = scalar_lea.vmem %s3991_s26, 144  ;;  %s3442_s22 = scalar_lea.vmem %s3991_s26, 160 }
  0xd6   : > { %p3436_p5 = scmp.ne.s32.totalorder %s3991_s26, %s3435_s24  ;;  %p3443_p4 = scmp.lt.s32.totalorder %s3991_s26, %s3991_s26 }
  0xd7   : > { %p3444_p10 = scmp.lt.s32.totalorder %s3442_s22, %s3435_s24 }
  0xd8   : > { %p3438_p7 = pnand %p3436_p5, %p3848_p8 }
  0xd9   : > { %p3445_p11 = por %p3444_p10, %p3443_p4 }
  0xda   : > { %p3439_p9 = pneg %p3438_p7 }
  0xdc   : > { %p3446_p12 = pnand %p3445_p11, %p3439_p9 }
  0xde   : > { %3449 = shalt.err (!%p3446_p12)
}
  0xdf   : > { %s4856_s4 = smov 1   ;;  %s4857_s11 = smov 16  }
  0xe0   : > { %3101 = dma.hbm_to_vmem [thread:$0]  (!%p3832_p6), %s4805_s13, 144, %s3991_s26, [#allocation13], %s4857_s11, %s4857_s11, %s4856_s4  }
  0xe1   : > { %s3668_s2 = smov [#allocation17]   ;;  %s3669_s25 = smov [#allocation20]  }
  0xe2   : > { %s663_s1 = sshll.u32 %s3668_s2, 4  ;;  %s687_s19 = sshll.u32 %s3669_s25, 4  ;;  %s664_s1 = int_to_ptr.vmem [resolvable:$true] %s663_s1  ;;  %s4041_s19 = int_to_ptr.vmem [resolvable:$true] %s687_s19 }
  0xe3   : > { %s3450_s22 = scalar_lea.hbm %s4807_s15, 16 }
  0xe4   : > { %p3451_p1 = scmp.ne.s32.totalorder %s4807_s15, %s3450_s22  ;;  %p3457_p0 = scmp.lt.u32.totalorder %s3450_s22, %s4807_s15 }
  0xe6   : > { %p3453_p3 = pnand %p3451_p1, %p3848_p8 }
  0xe8   : > { %p3454_p13 = pneg %p3453_p3 }
  0xea   : > { %p3459_p2 = pnand %p3457_p0, %p3454_p13 }
  0xec   : > { %3462 = shalt.err (!%p3459_p2)
}
  0xed   : > { %s3463_s4 = scalar_lea.vmem %s664_s1, 16  ;;  %s3470_s11 = scalar_lea.vmem %s664_s1, 32 }
  0xee   : > { %p3464_p5 = scmp.ne.s32.totalorder %s664_s1, %s3463_s4  ;;  %p3471_p4 = scmp.lt.s32.totalorder %s664_s1, %s664_s1 }
  0xef   : > { %p3472_p10 = scmp.lt.s32.totalorder %s3470_s11, %s3463_s4 }
  0xf0   : > { %p3466_p7 = pnand %p3464_p5, %p3848_p8 }
  0xf1   : > { %p3473_p11 = por %p3472_p10, %p3471_p4 }
  0xf2   : > { %p3467_p9 = pneg %p3466_p7 }
  0xf4   : > { %p3474_p12 = pnand %p3473_p11, %p3467_p9 }
  0xf6   : > { %3477 = shalt.err (!%p3474_p12)
}
  0xf7   : > { %3107 = dma.hbm_to_vmem [thread:$0]  (!%p3832_p6), %s4807_s15, 16, %s664_s1, [#allocation16]  }
  0xf8   : > { %s3478_s25 = scalar_lea.hbm %s4809_s17, 16 }
  0xf9   : > { %p3479_p1 = scmp.ne.s32.totalorder %s4809_s17, %s3478_s25  ;;  %p3485_p0 = scmp.lt.u32.totalorder %s3478_s25, %s4809_s17 }
  0xfb   : > { %p3481_p3 = pnand %p3479_p1, %p3848_p8 }
  0xfd   : > { %p3482_p13 = pneg %p3481_p3 }
  0xff   : > { %p3487_p2 = pnand %p3485_p0, %p3482_p13 }
 0x101   : > { %3490 = shalt.err (!%p3487_p2)
}
 0x102   : > { %s3491_s1 = scalar_lea.vmem %s4041_s19, 16  ;;  %s3498_s26 = scalar_lea.vmem %s4041_s19, 32 }
 0x103   : > { %p3492_p5 = scmp.ne.s32.totalorder %s4041_s19, %s3491_s1  ;;  %p3499_p4 = scmp.lt.s32.totalorder %s4041_s19, %s4041_s19 }
 0x104   : > { %p3500_p10 = scmp.lt.s32.totalorder %s3498_s26, %s3491_s1 }
 0x105   : > { %p3494_p7 = pnand %p3492_p5, %p3848_p8 }
 0x106   : > { %p3501_p11 = por %p3500_p10, %p3499_p4 }
 0x107   : > { %p3495_p9 = pneg %p3494_p7 }
 0x109   : > { %p3502_p12 = pnand %p3501_p11, %p3495_p9 }
 0x10b   : > { %3505 = shalt.err (!%p3502_p12)
}
 0x10c   : > { %3113 = dma.hbm_to_vmem [thread:$0]  (!%p3832_p6), %s4809_s17, 16, %s4041_s19, [#allocation19]  }
 0x10d   : > { %s3670_s27 = smov [#allocation21]   ;;  %s3506_s25 = scalar_lea.hbm %s4810_s18, 16 }
 0x10e   : > { %s698_s20 = sshll.u32 %s3670_s27, 4  ;;  %p3507_p1 = scmp.ne.s32.totalorder %s4810_s18, %s3506_s25  ;;  %s699_s20 = int_to_ptr.vmem [resolvable:$true] %s698_s20 }
 0x10f   : > { %p3513_p0 = scmp.lt.u32.totalorder %s3506_s25, %s4810_s18 }
 0x110   : > { %p3509_p3 = pnand %p3507_p1, %p3848_p8 }
 0x112   : > { %p3510_p13 = pneg %p3509_p3 }
 0x114   : > { %p3515_p2 = pnand %p3513_p0, %p3510_p13 }
 0x116   : > { %3518 = shalt.err (!%p3515_p2)
}
 0x117   : > { %s3519_s19 = scalar_lea.vmem %s699_s20, 16  ;;  %s3526_s1 = scalar_lea.vmem %s699_s20, 32 }
 0x118   : > { %p3520_p5 = scmp.ne.s32.totalorder %s699_s20, %s3519_s19  ;;  %p3527_p4 = scmp.lt.s32.totalorder %s699_s20, %s699_s20 }
 0x119   : > { %p3528_p10 = scmp.lt.s32.totalorder %s3526_s1, %s3519_s19 }
 0x11a   : > { %p3522_p7 = pnand %p3520_p5, %p3848_p8 }
 0x11b   : > { %p3529_p11 = por %p3528_p10, %p3527_p4 }
 0x11c   : > { %p3523_p9 = pneg %p3522_p7 }
 0x11e   : > { %p3530_p12 = pnand %p3529_p11, %p3523_p9 }
 0x120   : > { %3533 = shalt.err (!%p3530_p12)
}
 0x121   : > { %3116 = dma.hbm_to_vmem [thread:$0]  (!%p3832_p6), %s4810_s18, 16, %s699_s20, [#allocation22]  }
 0x122   : > { %s2692_s5 = sadd.s32 4294967294, %s3654_s30   ;;  %s4105_s6 = sadd.s32 1, %s3654_s30  }
 0x123   : > { %s51_s11 = sadd.s32 1, %s3650_s29  ;;  %s48_s27 = ssub.s32 %s3654_s30, %s4105_s6 }
 0x124   : > { %p58_p8 = scmp.ne.s32.totalorder %s3650_s29, %s3646_s28  ;;  %p49_p1 = scmp.eq.s32.totalorder %s48_s27, 0 }
 0x125   : > { %p59_p3 = scmp.eq.s32.totalorder %s3654_s30, 0  ;;  %p64_p13 = scmp.ne.s32.totalorder %s3646_s28, %s3642_s3 }
 0x126   : > { %p529_p0 = scmp.eq.s32.totalorder %s3816_s23, 1  ;;  %p4858_p5 = scmp.eq.s32.totalorder %s3816_s23, 0 }
 0x127   : > { %s4117_s0 = scalar_select %p49_p1, %s3650_s29, %s51_s11  }
 0x128   : > { %p60_p2 = por %p59_p3, %p58_p8  ;;  %p4121_p7 = por %p4858_p5, %p64_p13 }
 0x129   : > { %p4125_p6 = por %p529_p0, %p58_p8  ;;  %p535_p9 = scmp.eq.s32.totalorder %s2692_s5, 1 }
 0x12a   : > { %p3136_p4 = scmp.lt.s32.totalorder %s3654_s30, 2  ;;  %s718_s25 = sand.u32 1, %s3650_s29  }
 0x12b   : > { %s4860_s20 = scalar_select %p4125_p6, 1, 0 }
 0x12c   : > { %p4131_p10 = por %p535_p9, %p64_p13  ;;  %s2706_s24 = sshll.u32 %s718_s25, 4 }
 0x12d   : > { %s2773_s22 = sshll.u32 %s3654_s30, 8  ;;  %s4862_s1 = sld [smem:[#allocation33_spill]] }
 0x12e   : > { %s4861_s21 = scalar_select %p4131_p10, 1, 0 }
 0x12f   : > { %s722_s4 = scalar_lea.vmem [#allocation3], %s2706_s24  ;;  %p4141_p11 = pnand %p3136_p4, %p60_p2 }
 0x130   : > { %s729_s11 = sshll.u32 %s722_s4, 4  ;;  %s4147_s27 = scalar_lea.sflag [#allocation4], %s718_s25  ;;  %s4145_s11 = int_to_ptr.vmem [resolvable:$true] %s729_s11 }
 0x131   : > { %p3536_p8 = pneg %p4141_p11 }
 0x133   : > { %s4139_s26 = scalar_lea.hbm %s4862_s1, %s2773_s22  ;;  %s3539_s9 = scalar_lea.hbm %s4862_s1, 512 }
 0x134   : > { %s3534_s7 = scalar_lea.hbm %s4139_s26, 256  ;;  %p3540_p13 = scmp.lt.u32.totalorder %s4139_s26, %s4862_s1 }
 0x135   : > { %p3535_p12 = scmp.ne.s32.totalorder %s4139_s26, %s3534_s7  ;;  %p3541_p0 = scmp.lt.u32.totalorder %s3539_s9, %s3534_s7 }
 0x136   : > { %p3543_p5 = scmp.lt.u32.totalorder %s3534_s7, %s4139_s26 }
 0x137   : > { %p3537_p1 = pnand %p3536_p8, %p3535_p12  ;;  %p3542_p2 = por %p3541_p0, %p3540_p13 }
 0x139   : > { %p3538_p3 = pneg %p3537_p1  ;;  %p3544_p9 = por %p3543_p5, %p3542_p2 }
 0x13b   : > { %p3545_p4 = pnand %p3544_p9, %p3538_p3 }
 0x13d   : > { %3548 = shalt.err (!%p3545_p4)
}
 0x13e   : > { %s3549_s25 = scalar_lea.vmem %s4145_s11, 256  ;;  %s3671_s24 = smov [#allocation3]  }
 0x13f   : > { %p3550_p12 = scmp.ne.s32.totalorder %s4145_s11, %s3549_s25  ;;  %s3554_s22 = sshll.u32 %s3671_s24, 4  ;;  %s3555_s22 = int_to_ptr.vmem [resolvable:$false] %s3554_s22 }
 0x140   : > { %s3556_s19 = scalar_lea.vmem %s3555_s22, 512  ;;  %p3557_p6 = scmp.lt.s32.totalorder %s4145_s11, %s3555_s22 }
 0x141   : > { %p3552_p1 = pnand %p3550_p12, %p3536_p8  ;;  %p3558_p13 = scmp.lt.s32.totalorder %s3556_s19, %s3549_s25 }
 0x143   : > { %p3553_p10 = pneg %p3552_p1  ;;  %p3559_p0 = por %p3558_p13, %p3557_p6 }
 0x145   : > { %p3560_p2 = pnand %p3559_p0, %p3553_p10 }
 0x147   : > { %3563 = shalt.err (!%p3560_p2)
}
 0x148   : > { %s4864_s7 = smov 8   ;;  %s4865_s9 = smov 128  }
 0x149   : > { %3120 = dma.hbm_to_vmem [thread:$0]  (!%p4141_p11), %s4139_s26, 256, %s4145_s11, %s4147_s27, %s4865_s9, %s4865_s9, %s4864_s7  }
 0x14a   : > { %s4866_s4 = sld [smem:[#allocation32_spill]] }
 0x150   : > { %p4867_p8 = scmp.ne.s32.totalorder %s4866_s4, 0 }
 0x151   : > { %s4181_s24 = sand.u32 (!%p4867_p8), 1, %s3646_s28  }
 0x152   : > { %741 = sbr.rel (%p4867_p8) target bundleno = 1989 (0x7c5), region = 108  ;;  %s4829_s25 = sshll.u32 (!%p4867_p8), %s4181_s24, 4 }
 0x153   : > { %s744_s22 = scalar_lea.sflag (!%p4867_p8), [#allocation4], %s4181_s24  ;;  %s4187_s5 = scalar_lea.vmem (!%p4867_p8), [#allocation3], %s4829_s25 }
 0x159   : > { %3609 = dma.done.wait (%p4121_p7), %s744_s22, 256  }
 0x15a   : > { %3611 = vsyncadd (%p4121_p7), %s744_s22, 4294967040  ;;  %p4868_p6 = scmp.eq.s32.totalorder %s3816_s23, 0 }
 0x15c   : > { %3613 = dma.done.wait (%p4868_p6), [#allocation7], 1168   ;;  %p4869_p10 = pmov %p4868_p6 }
 0x15d   : > { %p4870_p11 = pmov %p4868_p6 }
 0x15e   : > { %3615 = vsyncadd (%p4869_p10), [#allocation7], 4294966128 }
 0x15f   : > { %3617 = dma.done.wait (%p4870_p11), [#allocation10], 2192   ;;  %p4871_p3 = pmov %p4868_p6 }
 0x161   : > { %3619 = vsyncadd (%p4871_p3), [#allocation10], 4294965104  ;;  %p4872_p5 = pmov %p4871_p3 }
 0x162   : > { %p4873_p9 = pmov %p4871_p3 }
 0x163   : > { %3621 = dma.done.wait (%p4872_p5), [#allocation13], 160  }
 0x164   : > { %3623 = vsyncadd (%p4873_p9), [#allocation13], 4294967136  ;;  %p4874_p7 = pmov %p4871_p3 }
 0x165   : > { %p4875_p4 = pmov %p4871_p3 }
 0x166   : > { %3625 = dma.done.wait (%p4874_p7), [#allocation16], 32  }
 0x167   : > { %3627 = vsyncadd (%p4875_p4), [#allocation16], 4294967264  ;;  %p4876_p12 = pmov %p4871_p3 }
 0x168   : > { %p4877_p1 = pmov %p4871_p3 }
 0x169   : > { %3629 = dma.done.wait (%p4876_p12), [#allocation19], 2064  }
 0x16a   : > { %3631 = vsyncadd (%p4877_p1), [#allocation19], 4294965232  ;;  %p4878_p13 = pmov %p4877_p1 }
 0x16b   : > { %p4879_p0 = pmov %p4877_p1 }
 0x16c   : > { %3633 = dma.done.wait (%p4878_p13), [#allocation22], 16  }
 0x16d   : > { %3635 = vsyncadd (%p4879_p0), [#allocation22], 4294967280  ;;  %v3672_v0 = vmov 0.0   ;;  %v2725_v1 = vld [vmem:[#allocation6 + $0x2] ss:$0 sm:$0xff]  ;;  %s3673_s2 = smov 4  }
 0x16e   : > { %853 = vst [vmem:[#allocation2 + $0x8] sm:$0xff] %v3672_v0  ;;  %857 = vst [vmem:[#allocation2 + $0x20] sm:$0xff] %v3672_v0  ;;  %v2731_v2 = vld [vmem:[#allocation6 + $0x8] ss:$0 sm:$0xff]  ;;  %942 = vrot.lane.b32.xlu0 %v2725_v1, %s3673_s2  ;;  %v2728_v3 = vld [vmem:[#allocation6 + $0x5] ss:$0 sm:$0xff] }
 0x16f   : > { %860 = vst [vmem:[#allocation2 + $0x38] sm:$0xff] %v3672_v0  ;;  %862 = vst [vmem:[#allocation2 + $0x48] sm:$0x3] %v3672_v0  ;;  %1139 = vrot.lane.b32.xlu1 %v2731_v2, %s3673_s2  ;;  %v2723_v4 = vld [vmem:[#allocation6] ss:$0 sm:$0xff]  ;;  %vm870_vm0 = vcmask 523264  }
 0x170   : > { %863 = vst [vmem:[#allocation2 + $0x50] sm:$0x3] %v3672_v0  ;;  %v2724_v5 = vld [vmem:[#allocation6 + $0x1] ss:$0 sm:$0xff]  ;;  %v867_v7 = vld [vmem:[%s4187_s5 + $0x8] sm:$0xff]  ;;  %s3674_s26 = smov 124  }
 0x171   : > { %v866_v6 = vld [vmem:[%s4187_s5] sm:$0xff]  ;;  %v869_v9 = vmax.f32 %v867_v7, 0.0  ;;  %v916_v10 = vmul.f32 0.0, %v2724_v5  ;;  %vm982_vm1 = vcmask 1046528   ;;  %vm1079_vm2 = vcmask 1045504   ;;  %s3675_s11 = smov 120  }
 0x172   : > { %v868_v8 = vmax.f32 %v866_v6, 0.0  ;;  %1034 = vrot.lane.b32.xlu0 %v2728_v3, %s3673_s2  ;;  %v2726_v11 = vld [vmem:[#allocation6 + $0x3] ss:$0 sm:$0xff]  ;;  %v2730_v13 = vld [vmem:[#allocation6 + $0x7] ss:$0 sm:$0xff]  ;;  %s4880_s7 = sld [smem:[#allocation35_spill]] }
 0x173   : > { %895 = vrot.lane.b32.xlu1 %v2723_v4, %s3674_s26  ;;  %872 = vst.msk [vmem:[#allocation2 + $0x38] sm:$0xff] %vm870_vm0, %v869_v9  ;;  %v2729_v14 = vld [vmem:[#allocation6 + $0x6] ss:$0 sm:$0xff]  ;;  %v2727_v15 = vld [vmem:[#allocation6 + $0x4] ss:$0 sm:$0xff]  ;;  %v1198_v53 = vld [vmem:[#allocation8] sm:$0xff] }
 0x174   : > { %871 = vst.msk [vmem:[#allocation2 + $0x20] sm:$0xff] %vm870_vm0, %v868_v8  ;;  %v1199_v54 = vld [vmem:[#allocation8 + $0x8] sm:$0xff]  ;;  %v1200_v55 = vld [vmem:[#allocation8 + $0x10] sm:$0xff]  ;;  %s4881_s22 = sld [smem:[#allocation36_spill]]  ;;  %v1201_v58 = vld [vmem:[#allocation8 + $0x18] sm:$0xff]  ;;  %vm1212_vm3 = vcmask 1040384  }
 0x175   : > { %v2939_v57 = vpack.c.bf16 %v1199_v54, %v1198_v53  ;;  %v2943_v59 = vpack.c.bf16 %v1201_v58, %v1200_v55  ;;  %v1202_v60 = vld [vmem:[#allocation8 + $0x20] sm:$0xff]  ;;  %v1203_v61 = vld [vmem:[#allocation8 + $0x28] sm:$0xff]  ;;  %vm854_vm4 = vcmask 130048   ;;  %vm1231_vm5 = vcmask 31744   ;;  %s4889_s4 = sld [smem:[#allocation45_spill]]  ;;  %s4890_s25 = sld [smem:[#allocation46_spill]] }
 0x176   : > { %971 = vrot.lane.b32.xlu0 %v2726_v11, %s3674_s26  ;;  %v2947_v62 = vpack.c.bf16 %v1203_v61, %v1202_v60  ;;  %855 = vst.msk [vmem:[#allocation2 + $0x10] sm:$0xff] %vm854_vm4, %v3672_v0  ;;  %858 = vst.msk [vmem:[#allocation2 + $0x28] sm:$0xff] %vm854_vm4, %v3672_v0  ;;  %vm864_vm6 = vcmask 123904   ;;  %vm1435_vm7 = vcmask 916480   ;;  %vm1763_vm8 = vcmask 64512   ;;  %s4892_s27 = sld [smem:[#allocation47_spill]] }
 0x177   : > { %v4230_v12 = vld [vmem:[#allocation2 + $0x50] sm:$0x3]  ;;  %922 = vrot.lane.b32.xlu1 %v916_v10, %s3674_s26  ;;  %2940 = vmatprep.subr.bf16.mxu0 %v2939_v57  ;;  %861 = vst.msk [vmem:[#allocation2 + $0x40] sm:$0xff] %vm854_vm4, %v3672_v0  ;;  %p4893_p8 = scmp.ne.s32.totalorder %s4860_s20, 0 }
 0x178   : > { %v1110_v16 = vmul.f32 %v2730_v13, %v4230_v12  ;;  %v2732_v52 = vld [vmem:[%s4880_s7] ss:$0 sm:$0xff]  ;;  %2942 = vmatpush3.bf16.msra.mxu0 %v2939_v57  ;;  %865 = vst.msk [vmem:[#allocation2 + $0x58] sm:$0x3] %vm864_vm6, %v3672_v0  ;;  %s4882_s7 = sld [smem:[#allocation38_spill]] }
 0x179   : > { %2944 = vmatprep.subr.bf16.mxu0 %v2943_v59 }
 0x17a   : > { %v4237_v18 = vld [vmem:[#allocation2 + $0x38] sm:$0xff]  ;;  %v1117_v25 = vrot.slane %v1110_v16, 2  ;;  %v2733_v56 = vld [vmem:[%s4881_s22] ss:$0 sm:$0xff]  ;;  %s4883_s22 = sld [smem:[#allocation39_spill]] }
 0x17b   : > { %v4235_v17 = vld [vmem:[#allocation2 + $0x20] sm:$0xff]  ;;  %1064 = vrot.lane.b32.xlu1 %v2729_v14, %s3674_s26  ;;  %v918_v20 = vmul.f32 %v2724_v5, %v4237_v18  ;;  %v1008_v22 = vmul.f32 %v2727_v15, %v4237_v18  ;;  %v1109_v24 = vmul.f32 %v2730_v13, %v4237_v18 }
 0x17c   : > { %v917_v19 = vmul.f32 %v2724_v5, %v4235_v17  ;;  %v1007_v21 = vmul.f32 %v2727_v15, %v4235_v17  ;;  %v1108_v23 = vmul.f32 %v2730_v13, %v4235_v17  ;;  %2946 = vmatpush3.bf16.msra.mxu0 %v2943_v59 }
 0x17d   : > { %v1012_v27 = vrot.slane %v1008_v22, 1  ;;  %v1115_v28 = vrot.slane %v1109_v24, 2  ;;  %2948 = vmatprep.subr.bf16.mxu0 %v2947_v62 }
 0x17e   : > { %924 = vrot.lane.b32.xlu0 %v917_v19, %s3674_s26  ;;  %v1011_v26 = vrot.slane %v1007_v21, 1  ;;  %v1114_v30 = vrot.slane %v1108_v23, 2 }
 0x17f   : > { %926 = vrot.lane.b32.xlu1 %v918_v20, %s3674_s26  ;;  %v1118_v31 = vsel %vm1079_vm2, %v1115_v28, %v1117_v25 }
 0x180   : > { %v1013_v29 = vsel %vm982_vm1, %v1011_v26, %v1012_v27  ;;  %v1116_v32 = vsel %vm1079_vm2, %v1114_v30, %v1115_v28  ;;  %2950 = vmatpush3.bf16.msra.mxu0 %v2947_v62 }
 0x182   : > { %1014 = vrot.lane.b32.xlu0 %v1011_v26, %s3674_s26 }
 0x183   : > { %1016 = vrot.lane.b32.xlu1 %v1013_v29, %s3674_s26  ;;  %v879_v29 = vld [vmem:[#allocation2 + $0x48] sm:$0x3] }
 0x186   : > { %1018 = vrot.lane.b32.xlu0 %v1012_v27, %s3674_s26 }
 0x187   : > { %1121 = vrot.lane.b32.xlu1 %v1116_v32, %s3674_s26 }
 0x18a   : > { %1119 = vrot.lane.b32.xlu0 %v1114_v30, %s3674_s26 }
 0x1e0   : > { %v943_v33 = vpop.permute.xlu0 %942 }
 0x1e1   : > { %v945_v34 = vmul.f32 0.0, %v943_v33  ;;  %v946_v35 = vmul.f32 %v943_v33, %v4235_v17  ;;  %v947_v38 = vmul.f32 %v943_v33, %v4237_v18  ;;  %v1140_v39 = vpop.permute.xlu1 %1139 }
 0x1e2   : > { %v1143_v42 = vmul.f32 %v1140_v39, %v4237_v18  ;;  %v1142_v43 = vmul.f32 %v1140_v39, %v4235_v17  ;;  %v1144_v45 = vmul.f32 %v1140_v39, %v4230_v12 }
 0x1e3   : > { %951 = vrot.lane.b32.xlu0 %v945_v34, %s3675_s11  ;;  %953 = vrot.lane.b32.xlu1 %v946_v35, %s3675_s11 }
 0x1e4   : > { %v1035_v36 = vpop.permute.xlu0 %1034  ;;  %v1148_v46 = vrot.slane %v1142_v43, 2  ;;  %v1149_v47 = vrot.slane %v1143_v42, 2  ;;  %v1151_v50 = vrot.slane %v1144_v45, 2 }
 0x1e5   : > { %v1037_v37 = vmul.f32 %v1035_v36, %v4235_v17  ;;  %v1038_v40 = vmul.f32 %v1035_v36, %v4237_v18  ;;  %v896_v63 = vpop.permute.xlu1 %895 }
 0x1e6   : > { %v1150_v49 = vsel %vm1079_vm2, %v1148_v46, %v1149_v47  ;;  %v1152_v51 = vsel %vm1079_vm2, %v1149_v47, %v1151_v50  ;;  %v898_v11 = vmul.f32 0.0, %v896_v63  ;;  %v901_v15 = vmul.f32 %v896_v63, %v4235_v17 }
 0x1e7   : > { %955 = vrot.lane.b32.xlu0 %v947_v38, %s3675_s11  ;;  %v1041_v41 = vrot.slane %v1037_v37, 1  ;;  %v1042_v44 = vrot.slane %v1038_v40, 1  ;;  %v903_v19 = vmul.f32 %v896_v63, %v4237_v18 }
 0x1e8   : > { %v972_v2 = vpop.permute.xlu0 %971 }
 0x1e9   : > { %1044 = vrot.lane.b32.xlu1 %v1041_v41, %s3675_s11  ;;  %v1043_v48 = vsel %vm982_vm1, %v1041_v41, %v1042_v44  ;;  %v923_v1 = vpop.permute.xlu1 %922  ;;  %v976_v13 = vmul.f32 0.0, %v972_v2  ;;  %v977_v14 = vmul.f32 %v972_v2, %v4237_v18  ;;  %v975_v16 = vmul.f32 %v972_v2, %v4235_v17 }
 0x1ea   : > { %v931_v20 = vadd.f32 %v923_v1, %v898_v11 }
 0x1eb   : > { %1123 = vrot.lane.b32.xlu0 %v1118_v31, %s3674_s26  ;;  %v985_v21 = vrot.slane %v976_v13, 1  ;;  %v987_v22 = vrot.slane %v977_v14, 1  ;;  %v984_v27 = vrot.slane %v975_v16, 1  ;;  %v1204_v16 = vld [vmem:[#allocation8 + $0x30] sm:$0xff] }
 0x1ed   : > { %1048 = vrot.lane.b32.xlu1 %v1042_v44, %s3675_s11  ;;  %v1065_v3 = vpop.permute.xlu1 %1064  ;;  %v988_v45 = vsel %vm982_vm1, %v984_v27, %v987_v22 }
 0x1ee   : > { %v1067_v32 = vmul.f32 0.0, %v1065_v3  ;;  %v1070_v33 = vmul.f32 %v1065_v3, %v4237_v18  ;;  %v1071_v39 = vmul.f32 %v1065_v3, %v879_v29  ;;  %v1072_v40 = vmul.f32 %v1065_v3, %v4230_v12 }
 0x1ef   : > { %1046 = vrot.lane.b32.xlu0 %v1043_v48, %s3675_s11 }
 0x1f0   : > { %v925_v4 = vpop.permute.xlu0 %924  ;;  %v1080_v47 = vrot.slane %v1067_v32, 2  ;;  %v1088_v12 = vrot.slane %v1072_v40, 2 }
 0x1f1   : > { %1153 = vrot.lane.b32.xlu1 %v1148_v46, %s3675_s11  ;;  %v927_v6 = vpop.permute.xlu1 %926  ;;  %v933_v25 = vadd.f32 %v925_v4, %v898_v11  ;;  %v934_v26 = vadd.f32 %v925_v4, %v901_v15  ;;  %v1068_v46 = vmul.f32 %v1065_v3, %v4235_v17 }
 0x1f2   : > { %v935_v30 = vadd.f32 %v927_v6, %v898_v11  ;;  %v936_v31 = vadd.f32 %v927_v6, %v903_v19  ;;  %v1205_v19 = vld [vmem:[#allocation8 + $0x38] sm:$0xff] }
 0x1f3   : > { %1155 = vrot.lane.b32.xlu0 %v1150_v49, %s3675_s11  ;;  %v1084_v49 = vrot.slane %v1070_v33, 2  ;;  %v1081_v59 = vrot.slane %v1068_v46, 2 }
 0x1f4   : > { %v1015_v5 = vpop.permute.xlu0 %1014 }
 0x1f5   : > { %1157 = vrot.lane.b32.xlu1 %v1152_v51, %s3675_s11  ;;  %v1017_v8 = vpop.permute.xlu1 %1016  ;;  %v1089_v4 = vsel %vm1079_vm2, %v1084_v49, %v1088_v12  ;;  %v1085_v15 = vsel %vm1079_vm2, %v1081_v59, %v1084_v49  ;;  %v2740_v12 = vld [vmem:[#allocation9 + $0x2] ss:$0 sm:$0xff] }
 0x1f7   : > { %1174 = vrot.lane.b32.xlu0 %v2732_v52, %s3674_s26 }
 0x1f8   : > { %v1019_v7 = vpop.permute.xlu0 %1018 }
 0x1f9   : > { %1189 = vrot.lane.b32.xlu1 %v2733_v56, %s3674_s26  ;;  %v4286_v10 = vpop.permute.xlu1 %1121  ;;  %v1086_v56 = vrot.slane %v1071_v39, 2  ;;  %s4830_s26 = smov 8  }
 0x1fb   : > { %v1087_v3 = vsel %vm1079_vm2, %v1080_v47, %v1086_v56 }
 0x1fc   : > { %v4284_v9 = vpop.permute.xlu0 %1119 }
 0x255   : > { %v952_v23 = vpop.permute.xlu0 %951  ;;  %v954_v24 = vpop.permute.xlu1 %953 }
 0x256   : > { %v960_v28 = vadd.f32 %v952_v23, %v931_v20  ;;  %v962_v36 = vadd.f32 %v954_v24, %v933_v25  ;;  %v963_v37 = vadd.f32 %v954_v24, %v934_v26  ;;  %v2951_v24 = vpack.c.bf16 %v1205_v19, %v1204_v16  ;;  %v4340_v16 = vld [vmem:[#allocation2 + $0x40] sm:$0xff] }
 0x258   : > { %v995_v34 = vadd.f32 %v985_v21, %v960_v28  ;;  %v996_v35 = vadd.f32 %v984_v27, %v960_v28  ;;  %v997_v18 = vadd.f32 %v985_v21, %v962_v36  ;;  %v998_v50 = vadd.f32 %v988_v45, %v963_v37  ;;  %2952 = vmatprep.subr.bf16.mxu0 %v2951_v24 }
 0x259   : > { %v956_v38 = vpop.permute.xlu0 %955  ;;  %2954 = vmatpush3.bf16.msra.mxu0 %v2951_v24 }
 0x25a   : > { %v964_v41 = vadd.f32 %v956_v38, %v935_v30  ;;  %v965_v42 = vadd.f32 %v956_v38, %v936_v31  ;;  %v1023_v43 = vadd.f32 %v1015_v5, %v995_v34  ;;  %v1024_v44 = vadd.f32 %v1015_v5, %v996_v35 }
 0x25b   : > { %v1045_v48 = vpop.permute.xlu1 %1044  ;;  %v1025_v63 = vadd.f32 %v1017_v8, %v997_v18  ;;  %v1026_v17 = vadd.f32 %v1017_v8, %v998_v50 }
 0x25c   : > { %v999_v51 = vadd.f32 %v985_v21, %v964_v41  ;;  %v1000_v52 = vadd.f32 %v987_v22, %v965_v42  ;;  %v1053_v53 = vadd.f32 %v1045_v48, %v1023_v43  ;;  %v1054_v54 = vadd.f32 %v1045_v48, %v1024_v44 }
 0x25d   : > { %v1124_v55 = vpop.permute.xlu0 %1123 }
 0x25e   : > { %v1027_v57 = vadd.f32 %v1019_v7, %v999_v51  ;;  %v1028_v58 = vadd.f32 %v1019_v7, %v1000_v52  ;;  %v1096_v1 = vadd.f32 %v1080_v47, %v1053_v53  ;;  %v1097_v2 = vadd.f32 %v1081_v59, %v1054_v54  ;;  %v2738_v59 = vld [vmem:[#allocation9] ss:$0 sm:$0xff] }
 0x25f   : > { %v1049_v60 = vpop.permute.xlu1 %1048 }
 0x260   : > { %v1057_v61 = vadd.f32 %v1049_v60, %v1027_v57  ;;  %v1058_v62 = vadd.f32 %v1049_v60, %v1028_v58  ;;  %v1128_v8 = vadd.f32 %v4284_v9, %v1096_v1  ;;  %v1129_v22 = vadd.f32 %v4284_v9, %v1097_v2  ;;  %v2743_v57 = vld [vmem:[#allocation9 + $0x5] ss:$0 sm:$0xff]  ;;  %v2746_v58 = vld [vmem:[#allocation9 + $0x8] ss:$0 sm:$0xff]  ;;  %v4316_v60 = vld [vmem:[#allocation9 + $0x1] ss:$0 sm:$0xff] }
 0x261   : > { %v1047_v5 = vpop.permute.xlu0 %1046 }
 0x262   : > { %v1100_v6 = vadd.f32 %v1087_v3, %v1057_v61  ;;  %v1101_v11 = vadd.f32 %v1089_v4, %v1058_v62  ;;  %v1055_v13 = vadd.f32 %v1047_v5, %v1025_v63  ;;  %v1056_v14 = vadd.f32 %v1047_v5, %v1026_v17  ;;  %v2741_v62 = vld [vmem:[#allocation9 + $0x3] ss:$0 sm:$0xff]  ;;  %v4325_v5 = vld [vmem:[#allocation2 + $0x10] sm:$0xff] }
 0x263   : > { %v1154_v7 = vpop.permute.xlu1 %1153  ;;  %v1382_v61 = vmul.f32 0.0, %v4316_v60 }
 0x264   : > { %v1098_v20 = vadd.f32 %v1080_v47, %v1055_v13  ;;  %v1099_v21 = vadd.f32 %v1085_v15, %v1056_v14  ;;  %v1132_v27 = vadd.f32 %v1124_v55, %v1100_v6  ;;  %v1133_v28 = vadd.f32 %v1124_v55, %v1101_v11  ;;  %v4329_v11 = vld [vmem:[#allocation2 + $0x28] sm:$0xff] }
 0x265   : > { %v1156_v23 = vpop.permute.xlu0 %1155  ;;  %v1162_v29 = vadd.f32 %v1154_v7, %v1128_v8  ;;  %v1163_v30 = vadd.f32 %v1154_v7, %v1129_v22  ;;  %v2744_v7 = vld [vmem:[#allocation9 + $0x6] ss:$0 sm:$0xff] }
 0x266   : > { %v1130_v25 = vadd.f32 %v4286_v10, %v1098_v20  ;;  %v1131_v26 = vadd.f32 %v4286_v10, %v1099_v21 }
 0x267   : > { %v1158_v31 = vpop.permute.xlu1 %1157 }
 0x268   : > { %v1164_v32 = vadd.f32 %v1156_v23, %v1130_v25  ;;  %v1165_v33 = vadd.f32 %v1156_v23, %v1131_v26  ;;  %v1166_v34 = vadd.f32 %v1158_v31, %v1132_v27  ;;  %v1167_v35 = vadd.f32 %v1158_v31, %v1133_v28  ;;  %v2736_v28 = vld [vmem:[%s4882_s7] ss:$0 sm:$0xff]  ;;  %s4884_s7 = sld [smem:[#allocation41_spill]] }
 0x269   : > { %v1175_v36 = vpop.permute.xlu0 %1174  ;;  %v2737_v31 = vld [vmem:[%s4883_s22] ss:$0 sm:$0xff]  ;;  %s4885_s22 = sld [smem:[#allocation42_spill]] }
 0x26a   : > { %v1178_v37 = vmul.f32 %v1175_v36, %v1163_v30  ;;  %v1180_v9 = vmul.f32 %v1175_v36, %v1165_v33  ;;  %v1177_v38 = vmul.f32 %v1175_v36, %v1162_v29  ;;  %v1179_v39 = vmul.f32 %v1175_v36, %v1164_v32 }
 0x26b   : > { %v1190_v40 = vpop.permute.xlu1 %1189  ;;  %v1182_v41 = vmul.f32 %v1175_v36, %v1167_v35  ;;  %v1181_v42 = vmul.f32 %v1175_v36, %v1166_v34 }
 0x26c   : > { %v1193_v10 = vadd.f32 %v1190_v40, %v1178_v37  ;;  %v1195_v43 = vadd.f32 %v1190_v40, %v1180_v9  ;;  %v1192_v44 = vadd.f32 %v1190_v40, %v1177_v38  ;;  %v1194_v45 = vadd.f32 %v1190_v40, %v1179_v39  ;;  %v2742_v37 = vld [vmem:[#allocation9 + $0x4] ss:$0 sm:$0xff] }
 0x26d   : > { %v1197_v46 = vadd.f32 %v1190_v40, %v1182_v41  ;;  %v1196_v47 = vadd.f32 %v1190_v40, %v1181_v42 }
 0x26e   : > { %v1216_v48 = vrot.slane %v1193_v10, 7  ;;  %v1217_v49 = vrot.slane %v1195_v43, 7  ;;  %v1213_v18 = vrot.slane %v1192_v44, 7  ;;  %v1214_v50 = vrot.slane %v1194_v45, 7  ;;  %v1345_v10 = vld [vmem:[#allocation2 + $0x50] sm:$0x3] }
 0x26f   : > { %v1221_v53 = vrot.slane %v1197_v46, 7  ;;  %v1219_v54 = vrot.slane %v1196_v47, 7  ;;  %v2745_v43 = vld [vmem:[#allocation9 + $0x7] ss:$0 sm:$0xff] }
 0x270   : > { %v1218_v51 = vsel %vm1212_vm3, %v1216_v48, %v1217_v49  ;;  %v1215_v52 = vsel %vm1212_vm3, %v1213_v18, %v1214_v50 }
 0x271   : > { %1225 = vrot.lane.b32.xlu1 %v1218_v51, %s3673_s2  ;;  %1223 = vrot.lane.b32.xlu0 %v1215_v52, %s3673_s2  ;;  %v1222_v55 = vsel %vm1212_vm3, %v1217_v49, %v1221_v53  ;;  %v1220_v56 = vsel %vm1212_vm3, %v1214_v50, %v1219_v54 }
 0x275   : > { %1229 = vrot.lane.b32.xlu1 %v1222_v55, %s3673_s2  ;;  %1227 = vrot.lane.b32.xlu0 %v1220_v56, %s3673_s2  ;;  %s3677_s2 = smov 112  }
 0x279   : > { %1408 = vrot.lane.b32.xlu0 %v2740_v12, %s4830_s26  ;;  %1518 = vrot.lane.b32.xlu1 %v2743_v57, %s4830_s26 }
 0x27d   : > { %1641 = vrot.lane.b32.xlu0 %v2746_v58, %s4830_s26  ;;  %1361 = vrot.lane.b32.xlu1 %v2738_v59, %s3675_s11 }
 0x281   : > { %1456 = vrot.lane.b32.xlu0 %v2741_v62, %s3675_s11  ;;  %1388 = vrot.lane.b32.xlu1 %v1382_v61, %s3675_s11 }
 0x2e3   : > { %v1226_v63 = vpop.permute.xlu1 %1225  ;;  %v1224_v17 = vpop.permute.xlu0 %1223 }
 0x2e4   : > { %v1232_v1 = vsel %vm1231_vm5, %v1224_v17, %v1226_v63 }
 0x2e5   : > { %2847 = vmatprep.mubr.msk.f32.mxu0 %vm870_vm0, %v1232_v1 }
 0x2e7   : > { %v1230_v2 = vpop.permute.xlu1 %1229  ;;  %v1228_v3 = vpop.permute.xlu0 %1227 }
 0x2e8   : > { %v1233_v4 = vsel %vm1231_vm5, %v1228_v3, %v1230_v2 }
 0x2e9   : > { %2848 = vmatmul.mubr.msk.f32.vlgmr.msra.gmra.mrb[0].mxu0 %vm870_vm0, %v1233_v4 }
 0x2eb   : > { %v4327_v6 = vpop.permute.xlu0 %1408  ;;  %v1519_v19 = vpop.permute.xlu1 %1518 }
 0x2ec   : > { %v1411_v13 = vmul.f32 0.0, %v4327_v6  ;;  %v1412_v14 = vmul.f32 %v4327_v6, %v4325_v5  ;;  %v1414_v15 = vmul.f32 %v4327_v6, %v4329_v11  ;;  %v1416_v20 = vmul.f32 %v4327_v6, %v4340_v16 }
 0x2ed   : > { %v1522_v21 = vmul.f32 %v1519_v19, %v4329_v11  ;;  %v1524_v8 = vmul.f32 %v1519_v19, %v4340_v16 }
 0x2ee   : > { %1423 = vrot.lane.b32.xlu0 %v1411_v13, %s3677_s2  ;;  %1425 = vrot.lane.b32.xlu1 %v1412_v14, %s3677_s2 }
 0x2ef   : > { %v1530_v22 = vrot.slane %v1522_v21, 1  ;;  %v1533_v23 = vrot.slane %v1524_v8, 1  ;;  %v4349_v24 = vpop.permute.xlu0 %1641 }
 0x2f0   : > { %v4355_v26 = vmul.f32 %v4349_v24, %v4329_v11 }
 0x2f1   : > { %v1534_v25 = vsel %vm982_vm1, %v1530_v22, %v1533_v23 }
 0x2f2   : > { %1567 = vrot.lane.b32.xlu0 %v2744_v7, %s3675_s11  ;;  %1429 = vrot.lane.b32.xlu1 %v1414_v15, %s3677_s2  ;;  %v1657_v27 = vrot.slane %v4355_v26, 2  ;;  %v1727_v26 = vld [vmem:[#allocation11 + $0x20] sm:$0xff] }
 0x2f3   : > { %v4362_v0 = vpop.permute.xlu0 %1456 }
 0x2f6   : > { %1433 = vrot.lane.b32.xlu1 %v1416_v20, %s3677_s2  ;;  %1668 = vrot.lane.b32.xlu0 %v1657_v27, %s3677_s2 }
 0x2fa   : > { %1537 = vrot.lane.b32.xlu1 %v1530_v22, %s3677_s2 }
 0x2fe   : > { %1541 = vrot.lane.b32.xlu1 %v1534_v25, %s3677_s2 }
 0x302   : > { %1545 = vrot.lane.b32.xlu1 %v1533_v23, %s3677_s2  ;;  %v1612_v23 = vmul.f32 %v2745_v43, %v1345_v10 }
 0x304   : > { %v1619_v25 = vrot.slane %v1612_v23, 2 }
 0x360   : > { %v4367_v29 = vpop.permute.xlu0 %1423 }
 0x364   : > { %v4374_v38 = vpop.permute.xlu0 %1567 }
 0x365   : > { %v1575_v47 = vmul.f32 %v4374_v38, %v1345_v10 }
 0x367   : > { %v1590_v3 = vrot.slane %v1575_v47, 2  ;;  %v1728_v47 = vld [vmem:[#allocation11 + $0x28] sm:$0xff] }
 0x3bc   : > { %v2849_v30 = vpop.f32.mrb[0].mxu0 }
 0x3bd   : > { %v1321_v32 = vmul.f32 %v2849_v30, %v2736_v28  ;;  %v1304_v33 = vpop.f32.mrb[1].mxu0  ;;  %v2747_v30 = vld [vmem:[%s4884_s7] ss:$0 sm:$0xff]  ;;  %s4886_s7 = sld [smem:[#allocation43_spill]] }
 0x3be   : > { %v1320_v34 = vmul.f32 %v2736_v28, %v1304_v33 }
 0x3bf   : > { %v1330_v35 = vadd.f32 %v2737_v31, %v1321_v32  ;;  %v1346_v32 = vld [vmem:[#allocation2 + $0x58] sm:$0x3] }
 0x3c0   : > { %v1329_v36 = vadd.f32 %v2737_v31, %v1320_v34  ;;  %v1647_v31 = vmul.f32 %v4349_v24, %v4340_v16  ;;  %v1649_v34 = vmul.f32 %v4349_v24, %v1346_v32 }
 0x3c1   : > { %v4372_v9 = vmax.f32 %v1330_v35, 0.0 }
 0x3c2   : > { %v4376_v39 = vmax.f32 %v1329_v36, 0.0  ;;  %v1660_v33 = vrot.slane %v1647_v31, 2  ;;  %v1664_v36 = vrot.slane %v1649_v34, 2 }
 0x3c3   : > { %v1384_v40 = vmul.f32 %v4316_v60, %v4372_v9  ;;  %v1415_v41 = vmul.f32 %v4327_v6, %v4372_v9  ;;  %v1492_v42 = vmul.f32 %v2742_v37, %v4372_v9  ;;  %v4389_v45 = vmul.f32 %v4362_v0, %v4372_v9 }
 0x3c4   : > { %v4385_v44 = vmul.f32 %v4362_v0, %v4376_v39  ;;  %v1491_v46 = vmul.f32 %v2742_v37, %v4376_v39  ;;  %v1523_v49 = vmul.f32 %v1519_v19, %v4372_v9  ;;  %v1644_v18 = vmul.f32 %v4349_v24, %v4376_v39 }
 0x3c5   : > { %1392 = vrot.lane.b32.xlu1 %v1384_v40, %s3675_s11  ;;  %1431 = vrot.lane.b32.xlu0 %v1415_v41, %s3677_s2  ;;  %v1496_v48 = vrot.slane %v1492_v42, 1  ;;  %v1521_v50 = vmul.f32 %v1519_v19, %v4376_v39  ;;  %v1646_v52 = vmul.f32 %v4349_v24, %v4372_v9  ;;  %v1610_v53 = vmul.f32 %v2745_v43, %v4376_v39  ;;  %v1723_v40 = vld [vmem:[#allocation11] sm:$0xff]  ;;  %v1724_v41 = vld [vmem:[#allocation11 + $0x8] sm:$0xff]  ;;  %v1725_v42 = vld [vmem:[#allocation11 + $0x10] sm:$0xff] }
 0x3c6   : > { %v1495_v51 = vrot.slane %v1491_v46, 1  ;;  %v1611_v54 = vmul.f32 %v2745_v43, %v4372_v9  ;;  %v1383_v55 = vmul.f32 %v4316_v60, %v4376_v39  ;;  %v1531_v56 = vrot.slane %v1523_v49, 1  ;;  %v1726_v43 = vld [vmem:[#allocation11 + $0x18] sm:$0xff] }
 0x3c7   : > { %v1656_v12 = vrot.slane %v1644_v18, 2  ;;  %v1529_v57 = vrot.slane %v1521_v50, 1  ;;  %v1658_v58 = vrot.slane %v1646_v52, 2  ;;  %v1616_v59 = vrot.slane %v1610_v53, 2  ;;  %v1730_v49 = vld [vmem:[#allocation11 + $0x38] sm:$0xff]  ;;  %v1731_v50 = vld [vmem:[#allocation11 + $0x40] sm:$0xff] }
 0x3c8   : > { %v1617_v61 = vrot.slane %v1611_v54, 2  ;;  %v1497_v62 = vsel %vm982_vm1, %v1495_v51, %v1496_v48  ;;  %v1471_v17 = vrot.slane %v4389_v45, 1  ;;  %v1468_v1 = vrot.slane %v4385_v44, 1  ;;  %v1733_v53 = vld [vmem:[#allocation11 + $0x50] sm:$0xff]  ;;  %v1734_v54 = vld [vmem:[#allocation11 + $0x58] sm:$0xff] }
 0x3c9   : > { %1502 = vrot.lane.b32.xlu1 %v1496_v48, %s3675_s11  ;;  %1390 = vrot.lane.b32.xlu0 %v1383_v55, %s3675_s11  ;;  %v1532_v63 = vsel %vm982_vm1, %v1529_v57, %v1531_v56  ;;  %v1659_v2 = vsel %vm1079_vm2, %v1656_v12, %v1658_v58  ;;  %v1413_v4 = vmul.f32 %v4327_v6, %v4376_v39  ;;  %v1729_v48 = vld [vmem:[#allocation11 + $0x30] sm:$0xff] }
 0x3ca   : > { %v1618_v60 = vsel %vm1079_vm2, %v1616_v59, %v1617_v61  ;;  %v4417_v13 = vmul.f32 %v4374_v38, %v4376_v39  ;;  %v1573_v14 = vmul.f32 %v4374_v38, %v4372_v9  ;;  %v4426_v15 = vsel %vm982_vm1, %v1468_v1, %v1471_v17 }
 0x3cb   : > { %v1648_v19 = vmul.f32 %v4349_v24, %v1345_v10  ;;  %v1620_v28 = vsel %vm1079_vm2, %v1617_v61, %v1619_v25  ;;  %v1661_v35 = vsel %vm1079_vm2, %v1657_v27, %v1660_v33  ;;  %v1665_v37 = vsel %vm1079_vm2, %v1660_v33, %v1664_v36  ;;  %v2748_v24 = vld [vmem:[%s4885_s22] ss:$0 sm:$0xff]  ;;  %s4887_s22 = sld [smem:[#allocation44_spill]] }
 0x3cc   : > { %v1583_v6 = vrot.slane %v4417_v13, 2  ;;  %v1586_v7 = vrot.slane %v1573_v14, 2  ;;  %v2955_v10 = vpack.c.bf16 %v1724_v41, %v1723_v40  ;;  %v2959_v46 = vpack.c.bf16 %v1726_v43, %v1725_v42 }
 0x3cd   : > { %1498 = vrot.lane.b32.xlu1 %v1495_v51, %s3675_s11  ;;  %1427 = vrot.lane.b32.xlu0 %v1413_v4, %s3677_s2  ;;  %v1662_v8 = vrot.slane %v1648_v19, 2  ;;  %v2963_v27 = vpack.c.bf16 %v1728_v47, %v1727_v26  ;;  %v2967_v18 = vpack.c.bf16 %v1730_v49, %v1729_v48  ;;  %v1732_v51 = vld [vmem:[#allocation11 + $0x48] sm:$0xff]  ;;  %v2975_v55 = vpack.c.bf16 %v1734_v54, %v1733_v53  ;;  %v4471_v4 = vpop.permute.xlu0 %1668 }
 0x3ce   : > { %v4433_v20 = vsel %vm1079_vm2, %v1586_v7, %v1590_v3  ;;  %v4438_v21 = vsel %vm1079_vm2, %v1583_v6, %v1586_v7  ;;  %2956 = vmatprep.subr.bf16.mxu1 %v2955_v10  ;;  %v2971_v52 = vpack.c.bf16 %v1732_v51, %v1731_v50  ;;  %v1570_v53 = vmul.f32 0.0, %v4374_v38 }
 0x3cf   : > { %v1663_v22 = vsel %vm1079_vm2, %v1658_v58, %v1662_v8  ;;  %2958 = vmatpush3.bf16.msra.mxu1 %v2955_v10  ;;  %v1362_v58 = vpop.permute.xlu1 %1361 }
 0x3d0   : > { %2960 = vmatprep.subr.bf16.mxu1 %v2959_v46  ;;  %v1369_v14 = vmul.f32 %v1362_v58, %v4372_v9  ;;  %v1365_v41 = vmul.f32 0.0, %v1362_v58 }
 0x3d1   : > { %1543 = vrot.lane.b32.xlu0 %v1531_v56, %s3677_s2  ;;  %1666 = vrot.lane.b32.xlu1 %v1656_v12, %s3677_s2  ;;  %v1735_v56 = vld [vmem:[#allocation11 + $0x60] sm:$0xff]  ;;  %v1736_v12 = vld [vmem:[#allocation11 + $0x68] sm:$0xff] }
 0x3d3   : > { %2962 = vmatpush3.bf16.msra.mxu1 %v2959_v46 }
 0x3d4   : > { %2964 = vmatprep.subr.bf16.mxu1 %v2963_v27 }
 0x3d5   : > { %1535 = vrot.lane.b32.xlu0 %v1529_v57, %s3677_s2  ;;  %1674 = vrot.lane.b32.xlu1 %v1663_v22, %s3677_s2  ;;  %v2979_v57 = vpack.c.bf16 %v1736_v12, %v1735_v56 }
 0x3d7   : > { %2966 = vmatpush3.bf16.msra.mxu1 %v2963_v27 }
 0x3d8   : > { %2968 = vmatprep.subr.bf16.mxu1 %v2967_v18 }
 0x3d9   : > { %1621 = vrot.lane.b32.xlu0 %v1616_v59, %s3675_s11  ;;  %1623 = vrot.lane.b32.xlu1 %v1618_v60, %s3675_s11  ;;  %v1389_v59 = vpop.permute.xlu1 %1388 }
 0x3da   : > { %v1397_v46 = vadd.f32 %v1389_v59, %v1365_v41 }
 0x3db   : > { %2970 = vmatpush3.bf16.msra.mxu1 %v2967_v18  ;;  %v1344_v18 = vld [vmem:[#allocation2 + $0x48] sm:$0x3] }
 0x3dc   : > { %2972 = vmatprep.subr.bf16.mxu1 %v2971_v52 }
 0x3dd   : > { %1625 = vrot.lane.b32.xlu0 %v1620_v28, %s3675_s11  ;;  %1670 = vrot.lane.b32.xlu1 %v1659_v2, %s3677_s2  ;;  %v1426_v61 = vpop.permute.xlu1 %1425 }
 0x3de   : > { %v1436_v26 = vsel %vm1435_vm7, %v4367_v29, %v1426_v61  ;;  %v1582_v61 = vrot.slane %v1570_v53, 2 }
 0x3df   : > { %2974 = vmatpush3.bf16.msra.mxu1 %v2971_v52  ;;  %v1446_v48 = vadd.f32 %v1436_v26, %v1397_v46 }
 0x3e0   : > { %2976 = vmatprep.subr.bf16.mxu1 %v2975_v55 }
 0x3e1   : > { %1500 = vrot.lane.b32.xlu0 %v1497_v62, %s3675_s11  ;;  %1699 = vrot.lane.b32.xlu1 %v2747_v30, %s3675_s11  ;;  %v1430_v62 = vpop.permute.xlu1 %1429  ;;  %v1367_v30 = vmul.f32 %v1362_v58, %v4376_v39 }
 0x3e3   : > { %2978 = vmatpush3.bf16.msra.mxu1 %v2975_v55  ;;  %v1480_v55 = vadd.f32 %v1468_v1, %v1446_v48 }
 0x3e4   : > { %2980 = vmatprep.subr.bf16.mxu1 %v2979_v57 }
 0x3e5   : > { %1539 = vrot.lane.b32.xlu0 %v1532_v63, %s3677_s2  ;;  %v1434_v63 = vpop.permute.xlu1 %1433 }
 0x3e7   : > { %2982 = vmatpush3.bf16.msra.mxu1 %v2979_v57 }
 0x3e9   : > { %1672 = vrot.lane.b32.xlu0 %v1661_v35, %s3677_s2  ;;  %v1538_v60 = vpop.permute.xlu1 %1537 }
 0x3ed   : > { %1676 = vrot.lane.b32.xlu0 %v1665_v37, %s3677_s2  ;;  %v4469_v2 = vpop.permute.xlu1 %1541 }
 0x3f1   : > { %1714 = vrot.lane.b32.xlu0 %v2748_v24, %s3675_s11  ;;  %v1546_v3 = vpop.permute.xlu1 %1545 }
 0x437   : > { %v1393_v7 = vpop.permute.xlu1 %1392  ;;  %v1432_v19 = vpop.permute.xlu0 %1431 }
 0x438   : > { %v1402_v8 = vadd.f32 %v1393_v7, %v1369_v14  ;;  %v1438_v22 = vsel %vm1435_vm7, %v1432_v19, %v1434_v63  ;;  %v1401_v43 = vadd.f32 %v1393_v7, %v1365_v41 }
 0x43a   : > { %v1450_v23 = vadd.f32 %v1438_v22, %v1402_v8  ;;  %v1449_v47 = vadd.f32 %v1432_v19, %v1401_v43 }
 0x43b   : > { %v1503_v25 = vpop.permute.xlu1 %1502  ;;  %v1391_v28 = vpop.permute.xlu0 %1390 }
 0x43c   : > { %v1484_v31 = vadd.f32 %v1471_v17, %v1450_v23  ;;  %v1400_v32 = vadd.f32 %v1391_v28, %v1367_v30  ;;  %v1459_v17 = vmul.f32 0.0, %v4362_v0  ;;  %v1399_v51 = vadd.f32 %v1391_v28, %v1365_v41 }
 0x43e   : > { %v1512_v36 = vadd.f32 %v1503_v25, %v1484_v31  ;;  %v1467_v49 = vrot.slane %v1459_v17, 1 }
 0x43f   : > { %v1428_v33 = vpop.permute.xlu0 %1427  ;;  %v1499_v35 = vpop.permute.xlu1 %1498 }
 0x440   : > { %v1437_v34 = vsel %vm1435_vm7, %v1428_v33, %v1430_v62  ;;  %v1483_v52 = vadd.f32 %v1467_v49, %v1449_v47  ;;  %v1447_v56 = vadd.f32 %v1428_v33, %v1399_v51  ;;  %v1470_v63 = vsel %vm982_vm1, %v1467_v49, %v1467_v49 }
 0x441   : > { %v1448_v9 = vadd.f32 %v1437_v34, %v1400_v32 }
 0x442   : > { %v1511_v58 = vadd.f32 %v1503_v25, %v1483_v52 }
 0x443   : > { %v1544_v37 = vpop.permute.xlu0 %1543  ;;  %v1482_v40 = vadd.f32 %v4426_v15, %v1448_v9  ;;  %v4481_v24 = vpop.permute.xlu1 %1666  ;;  %v1445_v15 = vadd.f32 %v4367_v29, %v1397_v46  ;;  %v1508_v29 = vadd.f32 %v1499_v35, %v1480_v55 }
 0x444   : > { %v1549_v42 = vsel %vm1435_vm7, %v1544_v37, %v1546_v3  ;;  %v1560_v19 = vadd.f32 %v1544_v37, %v1511_v58  ;;  %v1678_v13 = vsel %vm1435_vm7, %v4481_v24, %v4471_v4 }
 0x445   : > { %v1561_v10 = vadd.f32 %v1549_v42, %v1512_v36  ;;  %v1479_v0 = vadd.f32 %v1467_v49, %v1445_v15  ;;  %v1737_v42 = vld [vmem:[#allocation11 + $0x70] sm:$0xff] }
 0x447   : > { %v1536_v39 = vpop.permute.xlu0 %1535  ;;  %v1603_v45 = vadd.f32 %v4433_v20, %v1561_v10  ;;  %v1675_v50 = vpop.permute.xlu1 %1674  ;;  %v1574_v20 = vmul.f32 %v4374_v38, %v1344_v18  ;;  %v1507_v57 = vadd.f32 %v1499_v35, %v1479_v0  ;;  %v1481_v38 = vadd.f32 %v1470_v63, %v1447_v56  ;;  %v1738_v10 = vld [vmem:[#allocation11 + $0x78] sm:$0xff] }
 0x448   : > { %v1547_v12 = vsel %vm1435_vm7, %v1536_v39, %v1538_v60 }
 0x449   : > { %v1588_v62 = vrot.slane %v1574_v20, 2  ;;  %v1556_v14 = vadd.f32 %v1536_v39, %v1507_v57  ;;  %v1557_v7 = vadd.f32 %v1547_v12, %v1508_v29 }
 0x44b   : > { %v1622_v27 = vpop.permute.xlu0 %1621  ;;  %v1624_v59 = vpop.permute.xlu1 %1623  ;;  %v1589_v44 = vsel %vm1079_vm2, %v1582_v61, %v1588_v62  ;;  %v1598_v23 = vadd.f32 %v1582_v61, %v1556_v14  ;;  %v1599_v60 = vadd.f32 %v1583_v6, %v1557_v7 }
 0x44c   : > { %v1602_v31 = vadd.f32 %v1589_v44, %v1560_v19  ;;  %v2756_v19 = vld [vmem:[#allocation14 + $0x5] ss:$0 sm:$0xff]  ;;  %v2751_v44 = vld [vmem:[#allocation14] ss:$0 sm:$0xff] }
 0x44d   : > { %v1630_v36 = vadd.f32 %v1622_v27, %v1598_v23  ;;  %v1631_v37 = vadd.f32 %v1622_v27, %v1599_v60  ;;  %v4518_v23 = vld [vmem:[#allocation2 + $0x8] sm:$0xff] }
 0x44f   : > { %v1626_v54 = vpop.permute.xlu0 %1625  ;;  %v1671_v30 = vpop.permute.xlu1 %1670  ;;  %v1687_v47 = vadd.f32 %v4481_v24, %v1630_v36  ;;  %v1688_v27 = vadd.f32 %v1678_v13, %v1631_v37  ;;  %v2757_v13 = vld [vmem:[#allocation14 + $0x6] ss:$0 sm:$0xff] }
 0x450   : > { %v1634_v34 = vadd.f32 %v1626_v54, %v1602_v31  ;;  %v1635_v43 = vadd.f32 %v1626_v54, %v1603_v45 }
 0x452   : > { %v1691_v39 = vadd.f32 %v1675_v50, %v1634_v34 }
 0x453   : > { %v1501_v3 = vpop.permute.xlu0 %1500  ;;  %v1700_v17 = vpop.permute.xlu1 %1699 }
 0x454   : > { %v1509_v8 = vadd.f32 %v1501_v3, %v1481_v38  ;;  %v1510_v1 = vadd.f32 %v1501_v3, %v1482_v40  ;;  %v1702_v4 = vmul.f32 %v1700_v17, %v1687_v47  ;;  %v1703_v18 = vmul.f32 %v1700_v17, %v1688_v27  ;;  %v2753_v38 = vld [vmem:[#allocation14 + $0x2] ss:$0 sm:$0xff]  ;;  %v2749_v47 = vld [vmem:[%s4886_s7] ss:$0 sm:$0xff] }
 0x455   : > { %v1706_v52 = vmul.f32 %v1700_v17, %v1691_v39 }
 0x457   : > { %v1540_v22 = vpop.permute.xlu0 %1539 }
 0x458   : > { %v1548_v25 = vsel %vm1435_vm7, %v1540_v22, %v4469_v2  ;;  %v1558_v28 = vadd.f32 %v1540_v22, %v1509_v8  ;;  %v2759_v8 = vld [vmem:[#allocation14 + $0x8] ss:$0 sm:$0xff]  ;;  %v2754_v22 = vld [vmem:[#allocation14 + $0x3] ss:$0 sm:$0xff] }
 0x459   : > { %v1559_v32 = vadd.f32 %v1548_v25, %v1510_v1  ;;  %v4514_v1 = vld [vmem:[#allocation14 + $0x1] ss:$0 sm:$0xff] }
 0x45a   : > { %v1600_v33 = vadd.f32 %v1582_v61, %v1558_v28  ;;  %v1912_v60 = vmul.f32 %v4518_v23, %v4514_v1 }
 0x45b   : > { %v1601_v35 = vadd.f32 %v4438_v21, %v1559_v32  ;;  %v1673_v9 = vpop.permute.xlu0 %1672  ;;  %v2983_v21 = vpack.c.bf16 %v1738_v10, %v1737_v42 }
 0x45c   : > { %v1632_v40 = vadd.f32 %v1624_v59, %v1600_v33  ;;  %v1679_v2 = vsel %vm1435_vm7, %v1671_v30, %v1673_v9 }
 0x45d   : > { %v1633_v41 = vadd.f32 %v1624_v59, %v1601_v35  ;;  %2984 = vmatprep.subr.bf16.mxu1 %v2983_v21 }
 0x45e   : > { %v1689_v6 = vadd.f32 %v1671_v30, %v1632_v40  ;;  %2986 = vmatpush3.bf16.msra.mxu1 %v2983_v21  ;;  %v3224_v40 = vld [vmem:[%s4187_s5] sm:$0xff] }
 0x45f   : > { %v1690_v46 = vadd.f32 %v1679_v2, %v1633_v41  ;;  %v1677_v26 = vpop.permute.xlu0 %1676 }
 0x460   : > { %v1680_v15 = vsel %vm1435_vm7, %v1675_v50, %v1677_v26  ;;  %v1704_v51 = vmul.f32 %v1700_v17, %v1689_v6 }
 0x461   : > { %v1705_v48 = vmul.f32 %v1700_v17, %v1690_v46  ;;  %v1692_v49 = vadd.f32 %v1680_v15, %v1635_v43  ;;  %v2750_v15 = vld [vmem:[#allocation12] ss:$0 sm:$0xff] }
 0x463   : > { %v1707_v53 = vmul.f32 %v1700_v17, %v1692_v49  ;;  %v1715_v45 = vpop.permute.xlu0 %1714 }
 0x464   : > { %v1717_v20 = vadd.f32 %v1715_v45, %v1702_v4  ;;  %v1718_v54 = vadd.f32 %v1715_v45, %v1703_v18  ;;  %v1719_v0 = vadd.f32 %v1715_v45, %v1704_v51  ;;  %v1720_v55 = vadd.f32 %v1715_v45, %v1705_v48 }
 0x465   : > { %v1721_v56 = vadd.f32 %v1715_v45, %v1706_v52  ;;  %v1722_v12 = vadd.f32 %v1715_v45, %v1707_v53  ;;  %v2755_v52 = vld [vmem:[#allocation14 + $0x4] ss:$0 sm:$0xff] }
 0x466   : > { %v1745_v24 = vrot.slane %v1717_v20, 7  ;;  %v1746_v57 = vrot.slane %v1719_v0, 7  ;;  %v1748_v29 = vrot.slane %v1718_v54, 7  ;;  %v1749_v50 = vrot.slane %v1720_v55, 7 }
 0x467   : > { %v1751_v58 = vrot.slane %v1721_v56, 7  ;;  %v1753_v59 = vrot.slane %v1722_v12, 7  ;;  %v1875_v56 = vld [vmem:[#allocation2 + $0x50] sm:$0x3]  ;;  %v2758_v12 = vld [vmem:[#allocation14 + $0x7] ss:$0 sm:$0xff] }
 0x468   : > { %v1747_v61 = vsel %vm1212_vm3, %v1745_v24, %v1746_v57  ;;  %v1750_v62 = vsel %vm1212_vm3, %v1748_v29, %v1749_v50 }
 0x469   : > { %v3203_v63 = vpack.i.bf16 %v1750_v62, %v1747_v61  ;;  %v1752_v3 = vsel %vm1212_vm3, %v1746_v57, %v1751_v58  ;;  %v1754_v14 = vsel %vm1212_vm3, %v1749_v50, %v1753_v59 }
 0x46a   : > { %v3208_v7 = vpack.i.bf16 %v1754_v14, %v1752_v3 }
 0x46b   : > { %3204 = vrot.lane.b32.xlu1 %v3203_v63, %s4830_s26 }
 0x46c   : > { %3209 = vrot.lane.b32.xlu0 %v3208_v7, %s4830_s26 }
 0x46f   : > { %1938 = vrot.lane.b32.xlu1 %v2753_v38, %s4830_s26 }
 0x470   : > { %2047 = vrot.lane.b32.xlu0 %v2756_v19, %s4830_s26 }
 0x473   : > { %2170 = vrot.lane.b32.xlu1 %v2759_v8, %s4830_s26 }
 0x474   : > { %1891 = vrot.lane.b32.xlu0 %v2751_v44, %s3675_s11 }
 0x477   : > { %1985 = vrot.lane.b32.xlu1 %v2754_v22, %s3675_s11 }
 0x478   : > { %1918 = vrot.lane.b32.xlu0 %v1912_v60, %s3675_s11 }
 0x4dd   : > { %v3205_v25 = vpop.permute.xlu1 %3204 }
 0x4de   : > { %v3207_v28 = vunpack.i.h.bf16 %v3205_v25  ;;  %v3206_v30 = vunpack.i.l.bf16 %v3205_v25  ;;  %v3210_v31 = vpop.permute.xlu0 %3209 }
 0x4df   : > { %v3212_v32 = vunpack.i.h.bf16 %v3210_v31  ;;  %v3211_v33 = vunpack.i.l.bf16 %v3210_v31 }
 0x4e0   : > { %v1764_v34 = vsel %vm1763_vm8, %v3206_v30, %v3207_v28 }
 0x4e1   : > { %2882 = vmatprep.mubr.f32.mxu1 %v1764_v34  ;;  %v1765_v35 = vsel %vm1763_vm8, %v3211_v33, %v3212_v32  ;;  %v4526_v9 = vpop.permute.xlu1 %1938 }
 0x4e2   : > { %2883 = vmatmul.mubr.f32.vlgmr.msra.gmra.mrb[0].mxu1 %v1765_v35  ;;  %v1941_v36 = vmul.f32 %v4518_v23, %v4526_v9  ;;  %v1942_v37 = vmul.f32 %v4526_v9, %v4325_v5  ;;  %v1944_v41 = vmul.f32 %v4526_v9, %v4329_v11  ;;  %v2048_v6 = vpop.permute.xlu0 %2047  ;;  %v1946_v2 = vmul.f32 %v4526_v9, %v4340_v16 }
 0x4e3   : > { %2936 = vmatprep.mubr.msk.f32.mxu1 %vm870_vm0, %v3224_v40  ;;  %v2051_v5 = vmul.f32 %v2048_v6, %v4329_v11  ;;  %v2053_v42 = vmul.f32 %v2048_v6, %v4340_v16 }
 0x4e4   : > { %1953 = vrot.lane.b32.xlu1 %v1941_v36, %s3677_s2  ;;  %1955 = vrot.lane.b32.xlu0 %v1942_v37, %s3677_s2 }
 0x4e5   : > { %v2059_v10 = vrot.slane %v2051_v5, 1  ;;  %v2062_v43 = vrot.slane %v2053_v42, 1  ;;  %v4546_v39 = vpop.permute.xlu1 %2170 }
 0x4e6   : > { %v4551_v46 = vmul.f32 %v4546_v39, %v4329_v11 }
 0x4e7   : > { %v2063_v17 = vsel %vm982_vm1, %v2059_v10, %v2062_v43 }
 0x4e8   : > { %2096 = vrot.lane.b32.xlu1 %v2757_v13, %s3675_s11  ;;  %1959 = vrot.lane.b32.xlu0 %v1944_v41, %s3677_s2  ;;  %v2186_v26 = vrot.slane %v4551_v46, 2  ;;  %v2177_v13 = vmul.f32 %v4546_v39, %v1875_v56  ;;  %v2389_v46 = vld [vmem:[%s4887_s22] sm:$0xff] }
 0x4e9   : > { %v4559_v21 = vpop.permute.xlu1 %1985 }
 0x4ea   : > { %v2191_v5 = vrot.slane %v2177_v13, 2  ;;  %v1892_v13 = vpop.permute.xlu0 %1891 }
 0x4ec   : > { %1963 = vrot.lane.b32.xlu0 %v1946_v2, %s3677_s2  ;;  %2197 = vrot.lane.b32.xlu1 %v2186_v26, %s3677_s2 }
 0x4f0   : > { %2066 = vrot.lane.b32.xlu0 %v2059_v10, %s3677_s2  ;;  %v2141_v10 = vmul.f32 %v2758_v12, %v1875_v56 }
 0x4f4   : > { %2070 = vrot.lane.b32.xlu0 %v2063_v17, %s3677_s2 }
 0x4f8   : > { %2074 = vrot.lane.b32.xlu0 %v2062_v43, %s3677_s2  ;;  %v2148_v43 = vrot.slane %v2141_v10, 2 }
 0x556   : > { %v4564_v27 = vpop.permute.xlu1 %1953 }
 0x55a   : > { %v4568_v45 = vpop.permute.xlu1 %2096 }
 0x55b   : > { %v2104_v50 = vmul.f32 %v4568_v45, %v1875_v56  ;;  %v2255_v56 = vld [vmem:[#allocation18 + $0x18] sm:$0xff] }
 0x55d   : > { %v2119_v37 = vrot.slane %v2104_v50, 2 }
 0x5b5   : > { %v2884_v11 = vpop.f32.mrb[0].mxu1 }
 0x5b6   : > { %v1851_v48 = vmul.f32 %v2884_v11, %v2749_v47  ;;  %v1834_v49 = vpop.f32.mrb[1].mxu1  ;;  %v2176_v11 = vmul.f32 %v4546_v39, %v4340_v16  ;;  %v2252_v16 = vld [vmem:[#allocation18] sm:$0xff] }
 0x5b7   : > { %v1850_v4 = vmul.f32 %v2749_v47, %v1834_v49  ;;  %v2760_v47 = vld [vmem:[#allocation15] ss:$0 sm:$0xff] }
 0x5b8   : > { %v1860_v18 = vadd.f32 %v2750_v15, %v1851_v48  ;;  %v2189_v48 = vrot.slane %v2176_v11, 2 }
 0x5b9   : > { %v1859_v51 = vadd.f32 %v2750_v15, %v1850_v4  ;;  %v1876_v15 = vld [vmem:[#allocation2 + $0x58] sm:$0x3] }
 0x5ba   : > { %v4566_v53 = vmax.f32 %v1860_v18, 0.0  ;;  %v2178_v49 = vmul.f32 %v4546_v39, %v1876_v15  ;;  %v2190_v4 = vsel %vm1079_vm2, %v2186_v26, %v2189_v48  ;;  %v2390_v26 = vld [vmem:[%s4887_s22 + $0x8] sm:$0xff]  ;;  %v4687_v15 = vpop.permute.xlu1 %2197 }
 0x5bb   : > { %v4570_v20 = vmax.f32 %v1859_v51, 0.0  ;;  %v3019_v50 = vpack.c.bf16 %v2390_v26, %v2389_v46 }
 0x5bc   : > { %1864 = vst [vmem:[#allocation2 + $0x38] sm:$0xff] %v4566_v53  ;;  %v1945_v54 = vmul.f32 %v4526_v9, %v4566_v53  ;;  %v1914_v0 = vmul.f32 %v4514_v1, %v4566_v53  ;;  %v2021_v55 = vmul.f32 %v2755_v52, %v4566_v53  ;;  %v4585_v57 = vmul.f32 %v4559_v21, %v4566_v53 }
 0x5bd   : > { %1863 = vst [vmem:[#allocation2 + $0x20] sm:$0xff] %v4570_v20  ;;  %v4581_v24 = vmul.f32 %v4559_v21, %v4570_v20  ;;  %v2020_v29 = vmul.f32 %v2755_v52, %v4570_v20  ;;  %v2173_v59 = vmul.f32 %v4546_v39, %v4570_v20  ;;  %v2052_v61 = vmul.f32 %v2048_v6, %v4566_v53  ;;  %v2253_v52 = vld [vmem:[#allocation18 + $0x8] sm:$0xff] }
 0x5be   : > { %1961 = vrot.lane.b32.xlu1 %v1945_v54, %s3677_s2  ;;  %1922 = vrot.lane.b32.xlu0 %v1914_v0, %s3675_s11  ;;  %v2025_v58 = vrot.slane %v2021_v55, 1  ;;  %v2175_v62 = vmul.f32 %v4546_v39, %v4566_v53  ;;  %v2050_v3 = vmul.f32 %v2048_v6, %v4570_v20  ;;  %v2139_v14 = vmul.f32 %v2758_v12, %v4570_v20  ;;  %v2254_v54 = vld [vmem:[#allocation18 + $0x10] sm:$0xff]  ;;  %v2761_v0 = vld [vmem:[#allocation17] ss:$0 sm:$0xff] }
 0x5bf   : > { %v2024_v63 = vrot.slane %v2020_v29, 1  ;;  %v2140_v7 = vmul.f32 %v2758_v12, %v4566_v53  ;;  %v1913_v38 = vmul.f32 %v4514_v1, %v4570_v20  ;;  %v2185_v19 = vrot.slane %v2173_v59, 2  ;;  %v2256_v12 = vld [vmem:[#allocation18 + $0x20] sm:$0xff]  ;;  %v2257_v29 = vld [vmem:[#allocation18 + $0x28] sm:$0xff]  ;;  %v2392_v59 = vld [vmem:[%s4887_s22 + $0x18] sm:$0xff]  ;;  %3020 = vmatprep.subr.bf16.mxu1 %v3019_v50 }
 0x5c0   : > { %v2060_v8 = vrot.slane %v2052_v61, 1  ;;  %v2187_v44 = vrot.slane %v2175_v62, 2  ;;  %v2058_v22 = vrot.slane %v2050_v3, 1  ;;  %v2145_v60 = vrot.slane %v2139_v14, 2  ;;  %v2394_v3 = vld [vmem:[%s4887_s22 + $0x28] sm:$0xff]  ;;  %v2258_v14 = vld [vmem:[#allocation18 + $0x30] sm:$0xff]  ;;  %3022 = vmatpush3.bf16.msra.mxu1 %v3019_v50 }
 0x5c1   : > { %v2146_v25 = vrot.slane %v2140_v7, 2  ;;  %v2026_v28 = vsel %vm982_vm1, %v2024_v63, %v2025_v58  ;;  %v2000_v31 = vrot.slane %v4585_v57, 1  ;;  %v1997_v33 = vrot.slane %v4581_v24, 1  ;;  %v2259_v7 = vld [vmem:[#allocation18 + $0x38] sm:$0xff] }
 0x5c2   : > { %2031 = vrot.lane.b32.xlu0 %v2025_v58, %s3675_s11  ;;  %1920 = vrot.lane.b32.xlu1 %v1913_v38, %s3675_s11  ;;  %v2188_v30 = vsel %vm1079_vm2, %v2185_v19, %v2187_v44  ;;  %v2061_v1 = vsel %vm982_vm1, %v2058_v22, %v2060_v8  ;;  %v1943_v34 = vmul.f32 %v4526_v9, %v4570_v20  ;;  %v2193_v18 = vrot.slane %v2178_v49, 2  ;;  %v2391_v58 = vld [vmem:[%s4887_s22 + $0x10] sm:$0xff] }
 0x5c3   : > { %v2147_v32 = vsel %vm1079_vm2, %v2145_v60, %v2146_v25  ;;  %v4613_v35 = vmul.f32 %v4568_v45, %v4570_v20  ;;  %v2102_v36 = vmul.f32 %v4568_v45, %v4566_v53  ;;  %v4622_v40 = vsel %vm982_vm1, %v1997_v33, %v2000_v31 }
 0x5c4   : > { %v2192_v42 = vsel %vm1079_vm2, %v2187_v44, %v2191_v5  ;;  %v2149_v17 = vsel %vm1079_vm2, %v2146_v25, %v2148_v43  ;;  %v2194_v51 = vsel %vm1079_vm2, %v2189_v48, %v2193_v18  ;;  %v2987_v55 = vpack.c.bf16 %v2253_v52, %v2252_v16  ;;  %v2396_v44 = vld [vmem:[%s4887_s22 + $0x38] sm:$0xff]  ;;  %v1919_v5 = vpop.permute.xlu0 %1918 }
 0x5c5   : > { %v2112_v9 = vrot.slane %v4613_v35, 2  ;;  %v2115_v41 = vrot.slane %v2102_v36, 2  ;;  %v2991_v39 = vpack.c.bf16 %v2255_v56, %v2254_v54  ;;  %v2995_v61 = vpack.c.bf16 %v2257_v29, %v2256_v12  ;;  %v2265_v36 = vld [vmem:[#allocation18 + $0x68] sm:$0xff] }
 0x5c6   : > { %2027 = vrot.lane.b32.xlu0 %v2024_v63, %s3675_s11  ;;  %1957 = vrot.lane.b32.xlu1 %v1943_v34, %s3677_s2  ;;  %v3023_v62 = vpack.c.bf16 %v2392_v59, %v2391_v58  ;;  %v2393_v63 = vld [vmem:[%s4887_s22 + $0x20] sm:$0xff]  ;;  %v1899_v48 = vmul.f32 %v1892_v13, %v4566_v53  ;;  %v1894_v58 = vmul.f32 %v4518_v23, %v1892_v13 }
 0x5c7   : > { %v4629_v6 = vsel %vm1079_vm2, %v2115_v41, %v2119_v37  ;;  %v4634_v2 = vsel %vm1079_vm2, %v2112_v9, %v2115_v41  ;;  %2988 = vmatprep.subr.bf16.mxu0 %v2987_v55  ;;  %v3027_v38 = vpack.c.bf16 %v2394_v3, %v2393_v63  ;;  %v2264_v34 = vld [vmem:[#allocation18 + $0x60] sm:$0xff]  ;;  %v1988_v63 = vmul.f32 %v4518_v23, %v4559_v21 }
 0x5c8   : > { %2990 = vmatpush3.bf16.msra.mxu0 %v2987_v55  ;;  %3024 = vmatprep.subr.bf16.mxu1 %v3023_v62  ;;  %v3011_v37 = vpack.c.bf16 %v2265_v36, %v2264_v34  ;;  %v3225_v41 = vld [vmem:[%s4187_s5 + $0x8] sm:$0xff]  ;;  %v1927_v3 = vadd.f32 %v1919_v5, %v1894_v58  ;;  %s4888_s5 = smov 8  }
 0x5c9   : > { %2992 = vmatprep.subr.bf16.mxu0 %v2991_v39  ;;  %3026 = vmatpush3.bf16.msra.mxu1 %v3023_v62 }
 0x5ca   : > { %2195 = vrot.lane.b32.xlu0 %v2185_v19, %s3677_s2  ;;  %2072 = vrot.lane.b32.xlu1 %v2060_v8, %s3677_s2  ;;  %v2999_v19 = vpack.c.bf16 %v2259_v7, %v2258_v14  ;;  %v2395_v8 = vld [vmem:[%s4887_s22 + $0x30] sm:$0xff] }
 0x5cb   : > { %3028 = vmatprep.subr.bf16.mxu1 %v3027_v38  ;;  %v3031_v25 = vpack.c.bf16 %v2396_v44, %v2395_v8  ;;  %v1996_v8 = vrot.slane %v1988_v63, 1  ;;  %v1874_v44 = vld [vmem:[#allocation2 + $0x48] sm:$0x3] }
 0x5cc   : > { %2994 = vmatpush3.bf16.msra.mxu0 %v2991_v39 }
 0x5cd   : > { %2996 = vmatprep.subr.bf16.mxu0 %v2995_v61  ;;  %3030 = vmatpush3.bf16.msra.mxu1 %v3027_v38  ;;  %v1974_v38 = vadd.f32 %v4564_v27, %v1927_v3 }
 0x5ce   : > { %2203 = vrot.lane.b32.xlu0 %v2192_v42, %s3677_s2  ;;  %2064 = vrot.lane.b32.xlu1 %v2058_v22, %s3677_s2  ;;  %v2260_v22 = vld [vmem:[#allocation18 + $0x40] sm:$0xff]  ;;  %v1956_v42 = vpop.permute.xlu0 %1955 }
 0x5cf   : > { %3032 = vmatprep.subr.bf16.mxu1 %v3031_v25  ;;  %v1965_v14 = vsel %vm1435_vm7, %v4564_v27, %v1956_v42  ;;  %v1999_v42 = vsel %vm982_vm1, %v1996_v8, %v1996_v8 }
 0x5d0   : > { %2998 = vmatpush3.bf16.msra.mxu0 %v2995_v61 }
 0x5d1   : > { %3000 = vmatprep.subr.bf16.mxu0 %v2999_v19  ;;  %3034 = vmatpush3.bf16.msra.mxu1 %v3031_v25 }
 0x5d2   : > { %2152 = vrot.lane.b32.xlu0 %v2147_v32, %s3675_s11  ;;  %2150 = vrot.lane.b32.xlu1 %v2145_v60, %s3675_s11  ;;  %v2261_v60 = vld [vmem:[#allocation18 + $0x48] sm:$0xff]  ;;  %v2263_v32 = vld [vmem:[#allocation18 + $0x58] sm:$0xff]  ;;  %v1960_v10 = vpop.permute.xlu0 %1959 }
 0x5d4   : > { %3002 = vmatpush3.bf16.msra.mxu0 %v2999_v19  ;;  %2937 = vmatmul.mubr.msk.f32.vlgmr.msra.gmra.mrb[2].mxu1 %vm870_vm0, %v3225_v41  ;;  %v1975_v19 = vadd.f32 %v1965_v14, %v1927_v3 }
 0x5d6   : > { %2199 = vrot.lane.b32.xlu0 %v2188_v30, %s3677_s2  ;;  %2154 = vrot.lane.b32.xlu1 %v2149_v17, %s3675_s11  ;;  %v2262_v30 = vld [vmem:[#allocation18 + $0x50] sm:$0xff]  ;;  %v1964_v43 = vpop.permute.xlu0 %1963 }
 0x5da   : > { %2228 = vrot.lane.b32.xlu0 %v2760_v47, %s3675_s11  ;;  %2029 = vrot.lane.b32.xlu1 %v2026_v28, %s3675_s11  ;;  %v3003_v28 = vpack.c.bf16 %v2261_v60, %v2260_v22  ;;  %v2067_v17 = vpop.permute.xlu0 %2066 }
 0x5dc   : > { %3004 = vmatprep.subr.bf16.mxu0 %v3003_v28 }
 0x5dd   : > { %3006 = vmatpush3.bf16.msra.mxu0 %v3003_v28  ;;  %v2103_v28 = vmul.f32 %v4568_v45, %v1874_v44 }
 0x5de   : > { %2068 = vrot.lane.b32.xlu1 %v2061_v1, %s3677_s2  ;;  %v3007_v1 = vpack.c.bf16 %v2263_v32, %v2262_v30  ;;  %v4685_v47 = vpop.permute.xlu0 %2070  ;;  %v2008_v30 = vadd.f32 %v1996_v8, %v1974_v38  ;;  %v2009_v32 = vadd.f32 %v1997_v33, %v1975_v19 }
 0x5df   : > { %v2117_v5 = vrot.slane %v2103_v28, 2 }
 0x5e0   : > { %3008 = vmatprep.subr.bf16.mxu0 %v3007_v1 }
 0x5e1   : > { %3010 = vmatpush3.bf16.msra.mxu0 %v3007_v1 }
 0x5e2   : > { %2201 = vrot.lane.b32.xlu1 %v2190_v4, %s3677_s2  ;;  %3012 = vmatprep.subr.bf16.mxu0 %v3011_v37  ;;  %v2075_v11 = vpop.permute.xlu0 %2074 }
 0x5e5   : > { %3014 = vmatpush3.bf16.msra.mxu0 %v3011_v37 }
 0x5e6   : > { %2205 = vrot.lane.b32.xlu1 %v2194_v51, %s3677_s2  ;;  %s2774_s2 = sshll.u32 %s3816_s23, 8  ;;  %s3678_s23 = smov [#allocation23]  }
 0x5e7   : > { %s4747_s19 = scalar_lea.hbm %s4892_s27, %s2774_s2  ;;  %s3568_s1 = sshll.u32 %s3678_s23, 4  ;;  %s3569_s1 = int_to_ptr.vmem [resolvable:$false] %s3568_s1 }
 0x5e8   : > { %s3570_s8 = scalar_lea.vmem %s3569_s1, 512 }
 0x5ea   : > { %2243 = vrot.lane.b32.xlu1 %v2761_v0, %s3675_s11  ;;  %v1897_v0 = vmul.f32 %v1892_v13, %v4570_v20  ;;  %s4891_s11 = sshll.u32 %s4181_s24, 4 }
 0x5eb   : > { %s851_s26 = scalar_lea.vmem [#allocation23], %s4891_s11 }
 0x5ec   : > { %s2514_s7 = sshll.u32 %s851_s26, 4  ;;  %s4742_s7 = int_to_ptr.vmem [resolvable:$true] %s2514_s7 }
 0x5ed   : > { %s3564_s11 = scalar_lea.vmem %s4742_s7, 256  ;;  %p3571_p11 = scmp.lt.s32.totalorder %s4742_s7, %s3569_s1 }
 0x5ee   : > { %p3565_p2 = scmp.ne.s32.totalorder %s4742_s7, %s3564_s11  ;;  %p3572_p3 = scmp.lt.s32.totalorder %s3570_s8, %s3564_s11 }
 0x5f0   : > { %p3566_p6 = pnand %p3565_p2, %p4893_p8  ;;  %p3573_p5 = por %p3572_p3, %p3571_p11 }
 0x5f2   : > { %p3567_p10 = pneg %p3566_p6 }
 0x5f4   : > { %p3574_p9 = pnand %p3573_p5, %p3567_p10 }
 0x630   : > { %v1962_v49 = vpop.permute.xlu1 %1961  ;;  %v1923_v4 = vpop.permute.xlu0 %1922 }
 0x631   : > { %v1967_v18 = vsel %vm1435_vm7, %v1962_v49, %v1964_v43  ;;  %v1932_v51 = vadd.f32 %v1923_v4, %v1899_v48  ;;  %v1931_v62 = vadd.f32 %v1923_v4, %v1894_v58 }
 0x633   : > { %v1979_v16 = vadd.f32 %v1967_v18, %v1932_v51  ;;  %v1978_v7 = vadd.f32 %v1962_v49, %v1931_v62 }
 0x634   : > { %v2032_v52 = vpop.permute.xlu0 %2031  ;;  %v1921_v54 = vpop.permute.xlu1 %1920 }
 0x635   : > { %v2013_v55 = vadd.f32 %v2000_v31, %v1979_v16  ;;  %v1930_v56 = vadd.f32 %v1921_v54, %v1897_v0  ;;  %v1929_v60 = vadd.f32 %v1921_v54, %v1894_v58  ;;  %v2012_v25 = vadd.f32 %v1996_v8, %v1978_v7 }
 0x637   : > { %v2041_v53 = vadd.f32 %v2032_v52, %v2013_v55  ;;  %v2040_v37 = vadd.f32 %v2032_v52, %v2012_v25 }
 0x638   : > { %v1958_v39 = vpop.permute.xlu1 %1957  ;;  %v2028_v29 = vpop.permute.xlu0 %2027 }
 0x639   : > { %v1966_v12 = vsel %vm1435_vm7, %v1958_v39, %v1960_v10  ;;  %v1976_v1 = vadd.f32 %v1958_v39, %v1929_v60  ;;  %v2036_v27 = vadd.f32 %v2028_v29, %v2008_v30  ;;  %v2037_v36 = vadd.f32 %v2028_v29, %v2009_v32 }
 0x63a   : > { %v1977_v46 = vadd.f32 %v1966_v12, %v1930_v56 }
 0x63c   : > { %v2073_v26 = vpop.permute.xlu1 %2072  ;;  %v2011_v50 = vadd.f32 %v4622_v40, %v1977_v46  ;;  %v4698_v20 = vpop.permute.xlu0 %2195 }
 0x63d   : > { %v2078_v59 = vsel %vm1435_vm7, %v2073_v26, %v2075_v11  ;;  %v2089_v11 = vadd.f32 %v2073_v26, %v2040_v37  ;;  %v2207_v35 = vsel %vm1435_vm7, %v4698_v20, %v4687_v15  ;;  %v2266_v26 = vld [vmem:[#allocation18 + $0x70] sm:$0xff] }
 0x63e   : > { %v2090_v61 = vadd.f32 %v2078_v59, %v2041_v53 }
 0x640   : > { %v2065_v57 = vpop.permute.xlu1 %2064  ;;  %v2132_v31 = vadd.f32 %v4629_v6, %v2090_v61  ;;  %v2204_v22 = vpop.permute.xlu0 %2203  ;;  %v2099_v6 = vmul.f32 %v4518_v23, %v4568_v45  ;;  %v2010_v45 = vadd.f32 %v1999_v42, %v1976_v1 }
 0x641   : > { %v2076_v34 = vsel %vm1435_vm7, %v2065_v57, %v2067_v17  ;;  %v2085_v23 = vadd.f32 %v2065_v57, %v2036_v27 }
 0x642   : > { %v2111_v13 = vrot.slane %v2099_v6, 2  ;;  %v2086_v43 = vadd.f32 %v2076_v34, %v2037_v36 }
 0x644   : > { %v2151_v40 = vpop.permute.xlu1 %2150  ;;  %v2153_v41 = vpop.permute.xlu0 %2152  ;;  %v2118_v24 = vsel %vm1079_vm2, %v2111_v13, %v2117_v5  ;;  %v2127_v4 = vadd.f32 %v2111_v13, %v2085_v23  ;;  %v2128_v17 = vadd.f32 %v2112_v9, %v2086_v43 }
 0x645   : > { %v2131_v52 = vadd.f32 %v2118_v24, %v2089_v11 }
 0x646   : > { %v2159_v12 = vadd.f32 %v2151_v40, %v2127_v4  ;;  %v2160_v29 = vadd.f32 %v2151_v40, %v2128_v17  ;;  %v2766_v17 = vld [vmem:[%s4889_s4] ss:$0 sm:$0xff] }
 0x648   : > { %v2155_v21 = vpop.permute.xlu1 %2154  ;;  %v2200_v16 = vpop.permute.xlu0 %2199  ;;  %v2216_v63 = vadd.f32 %v4698_v20, %v2159_v12  ;;  %v2217_v3 = vadd.f32 %v2207_v35, %v2160_v29 }
 0x649   : > { %v2163_v55 = vadd.f32 %v2155_v21, %v2131_v52  ;;  %v2164_v58 = vadd.f32 %v2155_v21, %v2132_v31 }
 0x64b   : > { %v2220_v59 = vadd.f32 %v2204_v22, %v2163_v55 }
 0x64c   : > { %v2030_v10 = vpop.permute.xlu1 %2029  ;;  %v2229_v61 = vpop.permute.xlu0 %2228 }
 0x64d   : > { %v2038_v48 = vadd.f32 %v2030_v10, %v2010_v45  ;;  %v2039_v33 = vadd.f32 %v2030_v10, %v2011_v50  ;;  %v2267_v50 = vld [vmem:[#allocation18 + $0x78] sm:$0xff]  ;;  %v2231_v15 = vmul.f32 %v2229_v61, %v2216_v63  ;;  %v2232_v38 = vmul.f32 %v2229_v61, %v2217_v3 }
 0x64e   : > { %v2235_v8 = vmul.f32 %v2229_v61, %v2220_v59 }
 0x650   : > { %v2069_v49 = vpop.permute.xlu1 %2068 }
 0x651   : > { %v2077_v18 = vsel %vm1435_vm7, %v2069_v49, %v4685_v47  ;;  %v2087_v51 = vadd.f32 %v2069_v49, %v2038_v48 }
 0x652   : > { %v2088_v54 = vadd.f32 %v2077_v18, %v2039_v33 }
 0x653   : > { %v2129_v0 = vadd.f32 %v2111_v13, %v2087_v51  ;;  %v2767_v51 = vld [vmem:[%s4890_s25] ss:$0 sm:$0xff]  ;;  %s2501_s25 = scalar_lea.sflag [#allocation5], %s4181_s24 }
 0x654   : > { %v2130_v56 = vadd.f32 %v4634_v2, %v2088_v54  ;;  %v2202_v39 = vpop.permute.xlu1 %2201  ;;  %v3015_v2 = vpack.c.bf16 %v2267_v50, %v2266_v26 }
 0x655   : > { %v2161_v46 = vadd.f32 %v2153_v41, %v2129_v0  ;;  %v2208_v47 = vsel %vm1435_vm7, %v2200_v16, %v2202_v39  ;;  %v2763_v0 = vld [vmem:[#allocation21] ss:$0 sm:$0xff] }
 0x656   : > { %v2162_v53 = vadd.f32 %v2153_v41, %v2130_v56  ;;  %3016 = vmatprep.subr.bf16.mxu0 %v3015_v2 }
 0x657   : > { %v2218_v9 = vadd.f32 %v2200_v16, %v2161_v46  ;;  %3018 = vmatpush3.bf16.msra.mxu0 %v3015_v2  ;;  %v2762_v16 = vld [vmem:[#allocation20] ss:$0 sm:$0xff] }
 0x658   : > { %v2219_v62 = vadd.f32 %v2208_v47, %v2162_v53  ;;  %v2206_v57 = vpop.permute.xlu1 %2205 }
 0x659   : > { %v2209_v14 = vsel %vm1435_vm7, %v2204_v22, %v2206_v57  ;;  %v2233_v19 = vmul.f32 %v2229_v61, %v2218_v9 }
 0x65a   : > { %v2234_v7 = vmul.f32 %v2229_v61, %v2219_v62  ;;  %v2221_v40 = vadd.f32 %v2209_v14, %v2164_v58 }
 0x65c   : > { %v2236_v44 = vmul.f32 %v2229_v61, %v2221_v40  ;;  %v2244_v31 = vpop.permute.xlu1 %2243 }
 0x65d   : > { %v2246_v60 = vadd.f32 %v2244_v31, %v2231_v15  ;;  %v2247_v25 = vadd.f32 %v2244_v31, %v2232_v38  ;;  %v2248_v6 = vadd.f32 %v2244_v31, %v2233_v19  ;;  %v2249_v28 = vadd.f32 %v2244_v31, %v2234_v7 }
 0x65e   : > { %v2250_v21 = vadd.f32 %v2244_v31, %v2235_v8  ;;  %v2251_v30 = vadd.f32 %v2244_v31, %v2236_v44 }
 0x65f   : > { %v2274_v20 = vrot.slane %v2246_v60, 7  ;;  %v2275_v32 = vrot.slane %v2248_v6, 7  ;;  %v2277_v1 = vrot.slane %v2247_v25, 7  ;;  %v2278_v22 = vrot.slane %v2249_v28, 7 }
 0x660   : > { %v2280_v34 = vrot.slane %v2250_v21, 7  ;;  %v2282_v27 = vrot.slane %v2251_v30, 7 }
 0x661   : > { %v2276_v36 = vsel %vm1212_vm3, %v2274_v20, %v2275_v32  ;;  %v2279_v37 = vsel %vm1212_vm3, %v2277_v1, %v2278_v22 }
 0x662   : > { %v3213_v41 = vpack.i.bf16 %v2279_v37, %v2276_v36  ;;  %v2281_v13 = vsel %vm1212_vm3, %v2275_v32, %v2280_v34  ;;  %v2283_v5 = vsel %vm1212_vm3, %v2278_v22, %v2282_v27 }
 0x663   : > { %v3218_v42 = vpack.i.bf16 %v2283_v5, %v2281_v13 }
 0x664   : > { %3214 = vrot.lane.b32.xlu0 %v3213_v41, %s4888_s5 }
 0x665   : > { %3219 = vrot.lane.b32.xlu1 %v3218_v42, %s4888_s5 }
 0x6a7   : > { %v2938_v10 = vpop.f32.mrb[2].mxu1 }
 0x6a8   : > { %v2469_v4 = vpop.f32.mrb[3].mxu1  ;;  %v2486_v18 = vmul.f32 %v2938_v10, %v2766_v17 }
 0x6a9   : > { %v2485_v52 = vmul.f32 %v2766_v17, %v2469_v4 }
 0x6aa   : > { %v2495_v55 = vadd.f32 %v2767_v51, %v2486_v18 }
 0x6ab   : > { %v2494_v12 = vadd.f32 %v2767_v51, %v2485_v52 }
 0x6d6   : > { %v3215_v23 = vpop.permute.xlu0 %3214 }
 0x6d7   : > { %v3217_v43 = vunpack.i.h.bf16 %v3215_v23  ;;  %v3216_v45 = vunpack.i.l.bf16 %v3215_v23  ;;  %v3220_v11 = vpop.permute.xlu1 %3219 }
 0x6d8   : > { %v3222_v48 = vunpack.i.h.bf16 %v3220_v11  ;;  %v3221_v24 = vunpack.i.l.bf16 %v3220_v11 }
 0x6d9   : > { %v2292_v33 = vsel %vm1763_vm8, %v3216_v45, %v3217_v43 }
 0x6da   : > { %2917 = vmatprep.mubr.f32.mxu0 %v2292_v33  ;;  %v2293_v49 = vsel %vm1763_vm8, %v3221_v24, %v3222_v48 }
 0x6db   : > { %2918 = vmatmul.mubr.f32.vlgmr.msra.gmra.mrb[2].mxu0 %v2293_v49 }
 0x7ae   : > { %v2919_v54 = vpop.f32.mrb[2].mxu0 }
 0x7af   : > { %v2379_v56 = vmul.f32 %v2919_v54, %v2762_v16  ;;  %v2362_v39 = vpop.f32.mrb[3].mxu0 }
 0x7b0   : > { %v2378_v29 = vmul.f32 %v2762_v16, %v2362_v39 }
 0x7b1   : > { %v2388_v46 = vadd.f32 %v2763_v0, %v2379_v56 }
 0x7b2   : > { %v2387_v53 = vadd.f32 %v2763_v0, %v2378_v29 }
 0x7b3   : > { %v2497_v35 = vadd.f32 %v2495_v55, %v2388_v46 }
 0x7b4   : > { %v2496_v9 = vadd.f32 %v2494_v12, %v2387_v53 }
 0x7b5   : > { %2499 = vst [vmem:[%s851_s26 + $0x8] sm:$0xff] %v2497_v35 }
 0x7b6   : > { %2498 = vst [vmem:[%s851_s26] sm:$0xff] %v2496_v9 }
 0x7b7   : > { %3577 = shalt.err (!%p3574_p9)
}
 0x7b8   : > { %s3578_s26 = scalar_lea.hbm %s4747_s19, 256  ;;  %s3582_s4 = scalar_lea.hbm %s4892_s27, 512 }
 0x7b9   : > { %p3579_p7 = scmp.ne.s32.totalorder %s4747_s19, %s3578_s26  ;;  %p3583_p1 = scmp.lt.u32.totalorder %s4747_s19, %s4892_s27 }
 0x7ba   : > { %p3584_p13 = scmp.lt.u32.totalorder %s3582_s4, %s3578_s26  ;;  %p3586_p2 = scmp.lt.u32.totalorder %s3578_s26, %s4747_s19 }
 0x7bb   : > { %p3580_p4 = pnand %p3579_p7, %p4893_p8 }
 0x7bc   : > { %p3585_p0 = por %p3584_p13, %p3583_p1 }
 0x7bd   : > { %p3581_p12 = pneg %p3580_p4 }
 0x7be   : > { %p3587_p6 = por %p3586_p2, %p3585_p0 }
 0x7c0   : > { %p3588_p10 = pnand %p3587_p6, %p3581_p12 }
 0x7c2   : > { %3591 = shalt.err (!%p3588_p10)
}
 0x7c3   : > { %s3679_s8 = smov 128  }
 0x7c4   : > { %3081 = dma.vmem_to_hbm [thread:$0]  (%p4893_p8), %s4742_s7, 256, %s4747_s19, %s2501_s25, %s3679_s8, %s3679_s8, %s4888_s5  }
 0x7c5 PF: > { %s2529_s11 = sand.u32 1, %s3642_s3   ;;  %p4894_p11 = scmp.ne.s32.totalorder %s4861_s21, 0 }
 0x7c6   : > { %p4895_p3 = scmp.ge.s32.totalorder %s3654_s30, 2  ;;  %s2530_s26 = scalar_lea.sflag [#allocation5], %s2529_s11 }
 0x7c8   : > { %p3122_p5 = pnand %p4895_p3, %p4894_p11 }
 0x7ca   : > { %3637 = dma.done.wait (!%p3122_p5), %s2530_s26, 256  }
 0x7cb   : > { %3639 = vsyncadd (!%p3122_p5), %s2530_s26, 4294967040  ;;  %p41_p9 = scmp.ge.s32.totalorder %s4105_s6, 4   ;;  %s4896_s3 = smov %s3646_s28 }
 0x7cc   : > { %s4897_s28 = smov %s3650_s29  ;;  %s4898_s29 = smov %s4117_s0 }
 0x7cd   : > { %s4899_s30 = smov %s4105_s6  ;;  %43 = sbr.rel (!%p41_p9) target bundleno = 27 (0x1b), region = 197 }
 0x7d4   :  { %2535 = vsyncpa [#allocation4], 1 }
 0x7d5   :  { %2537 = vsyncpa [#allocation4 + $0x1], 1 }
 0x7d6   :  { %2538 = vsyncpa [#allocation7], 1 }
 0x7d7   :  { %2539 = vsyncpa [#allocation10], 1 }
 0x7d8   :  { %2540 = vsyncpa [#allocation13], 1 }
 0x7d9   :  { %2541 = vsyncpa [#allocation16], 1 }
 0x7da   :  { %2542 = vsyncpa [#allocation19], 1 }
 0x7db   :  { %2543 = vsyncpa [#allocation22], 1 }
 0x7dc   :  { %2544 = vsyncpa [#allocation5], 1 }
 0x7dd   :  { %2546 = vsyncpa [#allocation5 + $0x1], 1 }

</bundles_post_ra>
